<compile_context>
chip_gen: v7x
topology: tpu7x:2x2x1
jax: 0.10.0
libtpu: 0.0.40
codegen_flags: <defaults>
</compile_context>

<pallas_src>
import functools

import jax
import jax.numpy as jnp
from jax import lax
from jax.experimental import pallas as pl
from jax.experimental.pallas import tpu as pltpu


_SQRT_HALF = 0.7071067811865476
_LN_EPS = 1e-5


def alignment_kernel(x_ref, w1_ref, w2_ref, params_ref, o_ref, *, approximate_gelu):
    """LayerNorm(Dropout_eval(GELU(x @ W1 + b1) @ W2 + b2)) for one row tile, fully in VMEM.

    params_ref rows: [b1, b2, ln_gamma, ln_beta, 0, 0, 0, 0], each (1, d_proj), float32.
    """
    b1 = params_ref[0:1, :]
    b2 = params_ref[1:2, :]
    gamma = params_ref[2:3, :]
    beta = params_ref[3:4, :]

    # Linear 1: streamed tile is cast to the (resident) weight dtype; f32 accumulate on the MXU.
    x = x_ref[...].astype(w1_ref.dtype)
    h = jnp.dot(x, w1_ref[...], preferred_element_type=jnp.float32) + b1

    if approximate_gelu:
        h = jax.nn.gelu(h, approximate=True)  # tanh form -> transcendental on the EUP slot
    else:
        # Exact erf-based GELU (torch.nn.GELU() default).
        h = 0.5 * h * (1.0 + lax.erf(h * jnp.float32(_SQRT_HALF)))

    # Linear 2
    y = jnp.dot(h.astype(w2_ref.dtype), w2_ref[...], preferred_element_type=jnp.float32) + b2

    # Dropout is identity in eval/inference mode.
    # TODO(synk): training-mode dropout (pltpu.prng_* mask) not implemented; eval semantics only.

    # LayerNorm over features, eps = 1e-5 (PyTorch default). Centered two-pass variance.
    mean = jnp.mean(y, axis=-1, keepdims=True)
    yc = y - mean
    var = jnp.mean(yc * yc, axis=-1, keepdims=True)
    inv = lax.rsqrt(var + jnp.float32(_LN_EPS))
    o_ref[...] = (yc * inv * gamma + beta).astype(o_ref.dtype)


def _round_up(n, m):
    return ((n + m - 1) // m) * m


def _vmem_budget_bytes():
    """~82% of physical per-core VMEM (v7x: ~52 MiB, v5e/v6e: ~105 MiB); conservative fallback."""
    cap = 64 << 20  # assume v7x (smallest per-TensorCore VMEM) if the query fails
    try:
        info = pltpu.get_tpu_info()
        cap = int(getattr(info, "vmem_capacity_bytes", cap)) or cap
    except Exception:
        pass
    return max(32 << 20, min(int(cap * 0.82), 110 << 20))


def _choose_block_rows(batch, requested, per_row_bytes, vmem_budget, resident_bytes,
                       min_grid_steps=8):
    """Largest multiple-of-8 row tile fitting the VMEM budget, shrunk until the grid has at least
    `min_grid_steps` steps (>= 2 per TensorCore on v7x, plus pipeline depth)."""
    avail = vmem_budget - resident_bytes - (4 << 20)  # headroom for Mosaic internal scratch
    max_rows = max(8, (avail // per_row_bytes) // 8 * 8)
    block = min(int(requested), int(max_rows), _round_up(batch, 8))
    block = max(8, (block // 8) * 8)
    while block > 8 and pl.cdiv(batch, block) < min_grid_steps:
        block = max(8, (block // 2 // 8) * 8)
    return block


def alignment_layer(x, w1, b1, w2, b2, gamma, beta, *,
                    block_rows=512, stream_dtype=None, out_dtype=None,
                    approximate_gelu=False, single_buffer_resident=True):
    """x: (..., d_in); w1: (d_in, d_proj); w2: (d_proj, d_proj); b1/b2/gamma/beta: (d_proj,).

    Pass w1/w2 as bf16 for best performance: x is then streamed (and, if out_dtype=bf16, written)
    at half the HBM bytes, while all accumulation and the LayerNorm epilogue remain f32.
    Feature dims should be multiples of 128 (lane-dense) for unmasked stores / full MXU width.
    """
    d_in, d_proj = w1.shape
    assert x.shape[-1] == d_in and w2.shape == (d_proj, d_proj)

    lead_shape = x.shape[:-1]
    x2 = x.reshape(-1, d_in)
    B = x2.shape[0]

    stream_dtype = jnp.dtype(w1.dtype) if stream_dtype is None else jnp.dtype(stream_dtype)
    out_dtype = jnp.dtype(x.dtype) if out_dtype is None else jnp.dtype(out_dtype)
    if x2.dtype != stream_dtype:
        x2 = x2.astype(stream_dtype)

    # Fuse b1/b2/gamma/beta into one resident slab, padded to a full (8, d_proj) sublane tile so
    # the per-row broadcast reads in the kernel are unmasked.
    packed = jnp.stack([b1.reshape(-1), b2.reshape(-1),
                        gamma.reshape(-1), beta.reshape(-1)]).astype(jnp.float32)
    params = jnp.concatenate([packed, jnp.zeros((4, d_proj), jnp.float32)], axis=0)

    # --- VMEM-budgeted, pipeline-depth-aware row tiling -----------------------------------------
    per_row_bytes = (2 * d_in * stream_dtype.itemsize      # x tile (double-buffered)
                     + 2 * d_proj * out_dtype.itemsize     # out tile (double-buffered)
                     + 6 * d_proj * 4)                     # f32 h/y/moments + slack
    resident_bytes = (2 * w1.size * jnp.dtype(w1.dtype).itemsize      # conservative: assume the
                      + 2 * w2.size * jnp.dtype(w2.dtype).itemsize    # resident operands are
                      + 2 * params.size * 4)                          # double-buffered
    vmem_budget = _vmem_budget_bytes()
    block_rows = _choose_block_rows(B, block_rows, per_row_bytes, vmem_budget, resident_bytes)

    # Pad the batch to a multiple of the row tile; slice the output afterwards.
    B_pad = _round_up(B, block_rows)
    if B_pad != B:
        x2 = jnp.pad(x2, ((0, B_pad - B), (0, 0)))
    grid = (B_pad // block_rows,)

    kernel = functools.partial(alignment_kernel, approximate_gelu=approximate_gelu)

    def build(resident_pipeline_mode):
        rk = {} if resident_pipeline_mode is None else {"pipeline_mode": resident_pipeline_mode}
        return pl.pallas_call(
            kernel,
            out_shape=jax.ShapeDtypeStruct((B_pad, d_proj), out_dtype),
            grid_spec=pltpu.PrefetchScalarGridSpec(
                num_scalar_prefetch=0,
                grid=grid,
                in_specs=[
                    pl.BlockSpec((block_rows, d_in), lambda i: (i, 0)),        # x tile (streamed)
                    pl.BlockSpec((d_in, d_proj), lambda i: (0, 0), **rk),      # W1 (resident)
                    pl.BlockSpec((d_proj, d_proj), lambda i: (0, 0), **rk),    # W2 (resident)
                    pl.BlockSpec((8, d_proj), lambda i: (0, 0), **rk),         # [b1,b2,gamma,beta]
                ],
                out_specs=pl.BlockSpec((block_rows, d_proj), lambda i: (i, 0)),
            ),
            compiler_params=pltpu.CompilerParams(
                dimension_semantics=("parallel",),
                vmem_limit_bytes=int(vmem_budget),
            ),
        )

    if single_buffer_resident:
        try:
            out = build(pl.Buffered(1))(x2, w1, w2, params)
        except Exception:
            # Fallback: default double-buffered resident operands (pure VMEM cost, same semantics).
            out = build(None)(x2, w1, w2, params)
    else:
        out = build(None)(x2, w1, w2, params)

    return out[:B].reshape(*lead_shape, d_proj)


def reference(x, w1, b1, w2, b2, gamma, beta):
    h = x.astype(jnp.float32) @ w1.astype(jnp.float32) + b1
    h = jax.nn.gelu(h, approximate=False)
    y = h @ w2.astype(jnp.float32) + b2
    mean = jnp.mean(y, axis=-1, keepdims=True)
    var = jnp.mean((y - mean) ** 2, axis=-1, keepdims=True)
    return ((y - mean) / jnp.sqrt(var + _LN_EPS)) * gamma + beta


if __name__ == "__main__":
    input_dim = 128       # lane-dense feature dims
    projection_dim = 128

    key = jax.random.PRNGKey(0)
    kx1, kx2, kw1, kb1, kw2, kb2 = jax.random.split(key, 6)

    # Deterministic parameter init (Kaiming-uniform-ish bounds like nn.Linear).
    lim1 = input_dim ** -0.5
    lim2 = projection_dim ** -0.5
    w1 = jax.random.uniform(kw1, (input_dim, projection_dim), jnp.float32, -lim1, lim1)
    b1 = jax.random.uniform(kb1, (projection_dim,), jnp.float32, -lim1, lim1)
    w2 = jax.random.uniform(kw2, (projection_dim, projection_dim), jnp.float32, -lim2, lim2)
    b2 = jax.random.uniform(kb2, (projection_dim,), jnp.float32, -lim2, lim2)
    gamma = jnp.ones((projection_dim,), jnp.float32)   # LayerNorm weight init
    beta = jnp.zeros((projection_dim,), jnp.float32)   # LayerNorm bias init

    # --- Check 1: f32 path, awkward batch (exercises pad-to-tile + slice), tight tolerance. -----
    B1 = 509
    x1 = jax.random.normal(kx1, (B1, input_dim), dtype=jnp.float32)
    out1 = jax.block_until_ready(alignment_layer(x1, w1, b1, w2, b2, gamma, beta))
    ref1 = reference(x1, w1, b1, w2, b2, gamma, beta)
    assert out1.shape == (B1, projection_dim)
    assert jnp.allclose(out1, ref1, atol=1e-4, rtol=1e-4), "f32 path mismatch vs reference"

    # --- Check 2: bf16 streaming path (bf16 x/W1/W2/out, f32 accumulate + epilogue). ------------
    B2 = 512
    x2 = jax.random.normal(kx2, (B2, input_dim), dtype=jnp.float32)
    w1_bf16 = w1.astype(jnp.bfloat16)
    w2_bf16 = w2.astype(jnp.bfloat16)
    out2 = alignment_layer(x2, w1_bf16, b1, w2_bf16, b2, gamma, beta,
                           out_dtype=jnp.bfloat16)
    out2 = jax.block_until_ready(out2)
    assert out2.shape == (B2, projection_dim) and out2.dtype == jnp.bfloat16
    # Compare against a reference fed the same bf16-quantized inputs (f32 math inside).
    ref2 = reference(x2.astype(jnp.bfloat16).astype(jnp.float32),
                     w1_bf16.astype(jnp.float32), b1,
                     w2_bf16.astype(jnp.float32), b2, gamma, beta)
    assert jnp.allclose(out2.astype(jnp.float32), ref2, atol=6e-2, rtol=6e-2), \
        "bf16 streaming path mismatch vs reference"

    print("KERNEL_OK")
</pallas_src>

<mosaic_0001>
module attributes {stable_mosaic.version = 11 : i64} {
  func.func @alignment_kernel(%arg0: i32, %arg1: memref<64x128xf32, #tpu.memory_space<vmem>>, %arg2: memref<128x128xf32, #tpu.memory_space<vmem>>, %arg3: memref<128x128xf32, #tpu.memory_space<vmem>>, %arg4: memref<8x128xf32, #tpu.memory_space<vmem>>, %arg5: memref<64x128xf32, #tpu.memory_space<vmem>>) attributes {dimension_semantics = [#tpu.dimension_semantics<parallel>], iteration_bounds = array<i64: 8>, scalar_prefetch = 0 : i64, scratch_operands = 0 : i64, tpu.core_type = #tpu.core_type<tc>, window_params = [{transform_indices = @transform_0, window_bounds = array<i64: 64, 128>}, {pipeline_mode = #tpu.pipeline_mode<synchronous>, transform_indices = @transform_1, window_bounds = array<i64: 128, 128>}, {pipeline_mode = #tpu.pipeline_mode<synchronous>, transform_indices = @transform_2, window_bounds = array<i64: 128, 128>}, {pipeline_mode = #tpu.pipeline_mode<synchronous>, transform_indices = @transform_3, window_bounds = array<i64: 8, 128>}, {transform_indices = @transform_4, window_bounds = array<i64: 64, 128>}]} {
    %c0 = arith.constant 0 : index
    %c0_0 = arith.constant 0 : index
    %0 = vector.load %arg4[%c0, %c0_0] : memref<8x128xf32, #tpu.memory_space<vmem>>, vector<1x128xf32>
    %c1 = arith.constant 1 : index
    %c0_1 = arith.constant 0 : index
    %1 = vector.load %arg4[%c1, %c0_1] : memref<8x128xf32, #tpu.memory_space<vmem>>, vector<1x128xf32>
    %c2 = arith.constant 2 : index
    %c0_2 = arith.constant 0 : index
    %2 = vector.load %arg4[%c2, %c0_2] : memref<8x128xf32, #tpu.memory_space<vmem>>, vector<1x128xf32>
    %c3 = arith.constant 3 : index
    %c0_3 = arith.constant 0 : index
    %3 = vector.load %arg4[%c3, %c0_3] : memref<8x128xf32, #tpu.memory_space<vmem>>, vector<1x128xf32>
    %c0_4 = arith.constant 0 : index
    %c0_5 = arith.constant 0 : index
    %4 = vector.load %arg1[%c0_4, %c0_5] : memref<64x128xf32, #tpu.memory_space<vmem>>, vector<64x128xf32>
    %c0_6 = arith.constant 0 : index
    %c0_7 = arith.constant 0 : index
    %5 = vector.load %arg2[%c0_6, %c0_7] : memref<128x128xf32, #tpu.memory_space<vmem>>, vector<128x128xf32>
    %cst = arith.constant dense<0.000000e+00> : vector<64x128xf32>
    %6 = tpu.matmul %4, %5, %cst {dimension_numbers = #tpu.dot_dimension_numbers<[1], [0], [0], [1], [0, 0, 1, 1], [], []>} : vector<64x128xf32>, vector<128x128xf32>, vector<64x128xf32> -> vector<64x128xf32>
    %7 = vector.broadcast %0 : vector<1x128xf32> to vector<64x128xf32>
    %8 = arith.addf %6, %7 : vector<64x128xf32>
    %cst_8 = arith.constant 5.000000e-01 : f32
    %9 = vector.broadcast %cst_8 : f32 to vector<64x128xf32>
    %10 = arith.mulf %9, %8 : vector<64x128xf32>
    %cst_9 = arith.constant 0.707106769 : f32
    %11 = vector.broadcast %cst_9 : f32 to vector<64x128xf32>
    %12 = arith.mulf %8, %11 : vector<64x128xf32>
    %13 = math.erf %12 : vector<64x128xf32>
    %cst_10 = arith.constant 1.000000e+00 : f32
    %14 = vector.broadcast %cst_10 : f32 to vector<64x128xf32>
    %15 = arith.addf %14, %13 : vector<64x128xf32>
    %16 = arith.mulf %10, %15 : vector<64x128xf32>
    %c0_11 = arith.constant 0 : index
    %c0_12 = arith.constant 0 : index
    %17 = vector.load %arg3[%c0_11, %c0_12] : memref<128x128xf32, #tpu.memory_space<vmem>>, vector<128x128xf32>
    %cst_13 = arith.constant dense<0.000000e+00> : vector<64x128xf32>
    %18 = tpu.matmul %16, %17, %cst_13 {dimension_numbers = #tpu.dot_dimension_numbers<[1], [0], [0], [1], [0, 0, 1, 1], [], []>} : vector<64x128xf32>, vector<128x128xf32>, vector<64x128xf32> -> vector<64x128xf32>
    %19 = vector.broadcast %1 : vector<1x128xf32> to vector<64x128xf32>
    %20 = arith.addf %18, %19 : vector<64x128xf32>
    %cst_14 = arith.constant dense<0.000000e+00> : vector<64xf32>
    %21 = vector.multi_reduction <add>, %20, %cst_14 [1] : vector<64x128xf32> to vector<64xf32>
    %22 = vector.shape_cast %21 : vector<64xf32> to vector<64x1xf32>
    %cst_15 = arith.constant 1.280000e+02 : f32
    %23 = vector.broadcast %cst_15 : f32 to vector<64x1xf32>
    %24 = arith.divf %22, %23 : vector<64x1xf32>
    %25 = vector.broadcast %24 : vector<64x1xf32> to vector<64x128xf32>
    %26 = arith.subf %20, %25 : vector<64x128xf32>
    %27 = arith.mulf %26, %26 : vector<64x128xf32>
    %cst_16 = arith.constant dense<0.000000e+00> : vector<64xf32>
    %28 = vector.multi_reduction <add>, %27, %cst_16 [1] : vector<64x128xf32> to vector<64xf32>
    %29 = vector.shape_cast %28 : vector<64xf32> to vector<64x1xf32>
    %cst_17 = arith.constant 1.280000e+02 : f32
    %30 = vector.broadcast %cst_17 : f32 to vector<64x1xf32>
    %31 = arith.divf %29, %30 : vector<64x1xf32>
    %cst_18 = arith.constant 9.99999974E-6 : f32
    %32 = vector.broadcast %cst_18 : f32 to vector<64x1xf32>
    %33 = arith.addf %31, %32 : vector<64x1xf32>
    %34 = math.rsqrt %33 : vector<64x1xf32>
    %35 = vector.broadcast %34 : vector<64x1xf32> to vector<64x128xf32>
    %36 = arith.mulf %26, %35 : vector<64x128xf32>
    %37 = vector.broadcast %2 : vector<1x128xf32> to vector<64x128xf32>
    %38 = arith.mulf %36, %37 : vector<64x128xf32>
    %39 = vector.broadcast %3 : vector<1x128xf32> to vector<64x128xf32>
    %40 = arith.addf %38, %39 : vector<64x128xf32>
    %c0_19 = arith.constant 0 : index
    %c0_20 = arith.constant 0 : index
    %41 = vector.load %arg5[%c0_19, %c0_20] : memref<64x128xf32, #tpu.memory_space<vmem>>, vector<64x128xf32>
    tpu.vector_store %arg5[%c0_19, %c0_20], %40 {strides = array<i32>} : memref<64x128xf32, #tpu.memory_space<vmem>>, vector<64x128xf32>,
    return
  }
  func.func @transform_0(%arg0: i32) -> (i32, i32) {
    %c0_i32 = arith.constant 0 : i32
    %c0_i32_0 = arith.constant 0 : i32
    return %arg0, %c0_i32 : i32, i32
  }
  func.func @transform_1(%arg0: i32) -> (i32, i32) {
    %c0_i32 = arith.constant 0 : i32
    %c0_i32_0 = arith.constant 0 : i32
    %c0_i32_1 = arith.constant 0 : i32
    return %c0_i32, %c0_i32_0 : i32, i32
  }
  func.func @transform_2(%arg0: i32) -> (i32, i32) {
    %c0_i32 = arith.constant 0 : i32
    %c0_i32_0 = arith.constant 0 : i32
    %c0_i32_1 = arith.constant 0 : i32
    return %c0_i32, %c0_i32_0 : i32, i32
  }
  func.func @transform_3(%arg0: i32) -> (i32, i32) {
    %c0_i32 = arith.constant 0 : i32
    %c0_i32_0 = arith.constant 0 : i32
    %c0_i32_1 = arith.constant 0 : i32
    return %c0_i32, %c0_i32_0 : i32, i32
  }
  func.func @transform_4(%arg0: i32) -> (i32, i32) {
    %c0_i32 = arith.constant 0 : i32
    %c0_i32_0 = arith.constant 0 : i32
    return %arg0, %c0_i32 : i32, i32
  }
}

module attributes {stable_mosaic.version = 11 : i64} {
  func.func @alignment_kernel(%arg0: i32, %arg1: memref<64x128xf32, #tpu.memory_space<vmem>>, %arg2: memref<128x128xf32, #tpu.memory_space<vmem>>, %arg3: memref<128x128xf32, #tpu.memory_space<vmem>>, %arg4: memref<8x128xf32, #tpu.memory_space<vmem>>, %arg5: memref<64x128xf32, #tpu.memory_space<vmem>>) attributes {dimension_semantics = [#tpu.dimension_semantics<parallel>], iteration_bounds = array<i64: 8>, scalar_prefetch = 0 : i64, scratch_operands = 0 : i64, tpu.core_type = #tpu.core_type<tc>, window_params = [{transform_indices = @transform_0, window_bounds = array<i64: 64, 128>}, {pipeline_mode = #tpu.pipeline_mode<synchronous>, transform_indices = @transform_1, window_bounds = array<i64: 128, 128>}, {pipeline_mode = #tpu.pipeline_mode<synchronous>, transform_indices = @transform_2, window_bounds = array<i64: 128, 128>}, {pipeline_mode = #tpu.pipeline_mode<synchronous>, transform_indices = @transform_3, window_bounds = array<i64: 8, 128>}, {transform_indices = @transform_4, window_bounds = array<i64: 64, 128>}]} {
    %c0 = arith.constant 0 : index
    %c0_0 = arith.constant 0 : index
    %0 = vector.load %arg4[%c0, %c0_0] : memref<8x128xf32, #tpu.memory_space<vmem>>, vector<1x128xf32>
    %c1 = arith.constant 1 : index
    %c0_1 = arith.constant 0 : index
    %1 = vector.load %arg4[%c1, %c0_1] : memref<8x128xf32, #tpu.memory_space<vmem>>, vector<1x128xf32>
    %c2 = arith.constant 2 : index
    %c0_2 = arith.constant 0 : index
    %2 = vector.load %arg4[%c2, %c0_2] : memref<8x128xf32, #tpu.memory_space<vmem>>, vector<1x128xf32>
    %c3 = arith.constant 3 : index
    %c0_3 = arith.constant 0 : index
    %3 = vector.load %arg4[%c3, %c0_3] : memref<8x128xf32, #tpu.memory_space<vmem>>, vector<1x128xf32>
    %c0_4 = arith.constant 0 : index
    %c0_5 = arith.constant 0 : index
    %4 = vector.load %arg1[%c0_4, %c0_5] : memref<64x128xf32, #tpu.memory_space<vmem>>, vector<64x128xf32>
    %c0_6 = arith.constant 0 : index
    %c0_7 = arith.constant 0 : index
    %5 = vector.load %arg2[%c0_6, %c0_7] : memref<128x128xf32, #tpu.memory_space<vmem>>, vector<128x128xf32>
    %cst = arith.constant dense<0.000000e+00> : vector<64x128xf32>
    %6 = tpu.matmul %4, %5, %cst {dimension_numbers = #tpu.dot_dimension_numbers<[1], [0], [0], [1], [0, 0, 1, 1], [], []>} : vector<64x128xf32>, vector<128x128xf32>, vector<64x128xf32> -> vector<64x128xf32>
    %7 = vector.broadcast %0 : vector<1x128xf32> to vector<64x128xf32>
    %8 = arith.addf %6, %7 : vector<64x128xf32>
    %cst_8 = arith.constant 5.000000e-01 : f32
    %9 = vector.broadcast %cst_8 : f32 to vector<64x128xf32>
    %10 = arith.mulf %9, %8 : vector<64x128xf32>
    %cst_9 = arith.constant 0.707106769 : f32
    %11 = vector.broadcast %cst_9 : f32 to vector<64x128xf32>
    %12 = arith.mulf %8, %11 : vector<64x128xf32>
    %13 = math.erf %12 : vector<64x128xf32>
    %cst_10 = arith.constant 1.000000e+00 : f32
    %14 = vector.broadcast %cst_10 : f32 to vector<64x128xf32>
    %15 = arith.addf %14, %13 : vector<64x128xf32>
    %16 = arith.mulf %10, %15 : vector<64x128xf32>
    %c0_11 = arith.constant 0 : index
    %c0_12 = arith.constant 0 : index
    %17 = vector.load %arg3[%c0_11, %c0_12] : memref<128x128xf32, #tpu.memory_space<vmem>>, vector<128x128xf32>
    %cst_13 = arith.constant dense<0.000000e+00> : vector<64x128xf32>
    %18 = tpu.matmul %16, %17, %cst_13 {dimension_numbers = #tpu.dot_dimension_numbers<[1], [0], [0], [1], [0, 0, 1, 1], [], []>} : vector<64x128xf32>, vector<128x128xf32>, vector<64x128xf32> -> vector<64x128xf32>
    %19 = vector.broadcast %1 : vector<1x128xf32> to vector<64x128xf32>
    %20 = arith.addf %18, %19 : vector<64x128xf32>
    %cst_14 = arith.constant dense<0.000000e+00> : vector<64xf32>
    %21 = vector.multi_reduction <add>, %20, %cst_14 [1] : vector<64x128xf32> to vector<64xf32>
    %22 = vector.shape_cast %21 : vector<64xf32> to vector<64x1xf32>
    %cst_15 = arith.constant 1.280000e+02 : f32
    %23 = vector.broadcast %cst_15 : f32 to vector<64x1xf32>
    %24 = arith.divf %22, %23 : vector<64x1xf32>
    %25 = vector.broadcast %24 : vector<64x1xf32> to vector<64x128xf32>
    %26 = arith.subf %20, %25 : vector<64x128xf32>
    %27 = arith.mulf %26, %26 : vector<64x128xf32>
    %cst_16 = arith.constant dense<0.000000e+00> : vector<64xf32>
    %28 = vector.multi_reduction <add>, %27, %cst_16 [1] : vector<64x128xf32> to vector<64xf32>
    %29 = vector.shape_cast %28 : vector<64xf32> to vector<64x1xf32>
    %cst_17 = arith.constant 1.280000e+02 : f32
    %30 = vector.broadcast %cst_17 : f32 to vector<64x1xf32>
    %31 = arith.divf %29, %30 : vector<64x1xf32>
    %cst_18 = arith.constant 9.99999974E-6 : f32
    %32 = vector.broadcast %cst_18 : f32 to vector<64x1xf32>
    %33 = arith.addf %31, %32 : vector<64x1xf32>
    %34 = math.rsqrt %33 : vector<64x1xf32>
    %35 = vector.broadcast %34 : vector<64x1xf32> to vector<64x128xf32>
    %36 = arith.mulf %26, %35 : vector<64x128xf32>
    %37 = vector.broadcast %2 : vector<1x128xf32> to vector<64x128xf32>
    %38 = arith.mulf %36, %37 : vector<64x128xf32>
    %39 = vector.broadcast %3 : vector<1x128xf32> to vector<64x128xf32>
    %40 = arith.addf %38, %39 : vector<64x128xf32>
    %c0_19 = arith.constant 0 : index
    %c0_20 = arith.constant 0 : index
    %41 = vector.load %arg5[%c0_19, %c0_20] : memref<64x128xf32, #tpu.memory_space<vmem>>, vector<64x128xf32>
    tpu.vector_store %arg5[%c0_19, %c0_20], %40 {strides = array<i32>} : memref<64x128xf32, #tpu.memory_space<vmem>>, vector<64x128xf32>,
    return
  }
  func.func @transform_0(%arg0: i32) -> (i32, i32) {
    %c0_i32 = arith.constant 0 : i32
    %c0_i32_0 = arith.constant 0 : i32
    return %arg0, %c0_i32 : i32, i32
  }
  func.func @transform_1(%arg0: i32) -> (i32, i32) {
    %c0_i32 = arith.constant 0 : i32
    %c0_i32_0 = arith.constant 0 : i32
    %c0_i32_1 = arith.constant 0 : i32
    return %c0_i32, %c0_i32_0 : i32, i32
  }
  func.func @transform_2(%arg0: i32) -> (i32, i32) {
    %c0_i32 = arith.constant 0 : i32
    %c0_i32_0 = arith.constant 0 : i32
    %c0_i32_1 = arith.constant 0 : i32
    return %c0_i32, %c0_i32_0 : i32, i32
  }
  func.func @transform_3(%arg0: i32) -> (i32, i32) {
    %c0_i32 = arith.constant 0 : i32
    %c0_i32_0 = arith.constant 0 : i32
    %c0_i32_1 = arith.constant 0 : i32
    return %c0_i32, %c0_i32_0 : i32, i32
  }
  func.func @transform_4(%arg0: i32) -> (i32, i32) {
    %c0_i32 = arith.constant 0 : i32
    %c0_i32_0 = arith.constant 0 : i32
    return %arg0, %c0_i32 : i32, i32
  }
}

</mosaic_0001>

<bundles_post_ra>
// kernel: tpu_custom_call.1
= control target key start
LH: loop header
LB: loop body
LE: loop exit
PB: predicated region body
PF: predicated region fallthrough
CT: control target
= control target key end

     0   :  { %9 = vsyncpa [#allocation3], 0  ;;  %s1600_s0 = inlined_call_operand.hbm [shape: f32[512,128], index: 0, kind: input, shape index: {}]   ;;  %s1601_s1 = inlined_call_operand.hbm [shape: f32[128,128], index: 1, kind: input, shape index: {}]   ;;  %s1602_s2 = inlined_call_operand.hbm [shape: f32[128,128], index: 2, kind: input, shape index: {}]   ;;  %s1603_s3 = inlined_call_operand.vmem [shape: f32[8,128], index: 3, kind: input, shape index: {}]   ;;  %s1604_s4 = inlined_call_operand.hbm [shape: f32[512,128], index: 4, kind: output, shape index: {}]  }
   0x1   :  { %11 = vsyncpa [#allocation3 + $0x1], 0 }
   0x2   :  { %12 = vsyncpa [#allocation6], 0 }
   0x3   :  { %13 = vsyncpa [#allocation4], 0 }
   0x4   :  { %15 = vsyncpa [#allocation4 + $0x1], 0  ;;  %s1294_s15 = smov 0   ;;  %s1296_s16 = smov 0  }
   0x5   :  { %s1298_s17 = smov 0   ;;  %s1300_s18 = smov 0  }
   0x6 LB: > { %s1315_s19 = sadd.s32 4294967295, %s1259_s18   ;;  %s776_s20 = sadd.s32 4294967294, %s1259_s18   ;;  %s1259_s18 = sphi %s1300_s18, %s1623_s18   ;;  %s1255_s17 = sphi %s1298_s17, %s1622_s17   ;;  %s1251_s16 = sphi %s1296_s16, %s1621_s16   ;;  %s1247_s15 = sphi %s1294_s15, %s1620_s15  }
   0x7   : > { %p41_p0 = scmp.ne.s32.totalorder %s1251_s16, %s1247_s15  ;;  %p1605_p1 = scmp.eq.s32.totalorder %s1315_s19, 0 }
   0x8   : > { %p134_p3 = scmp.eq.s32.totalorder %s776_s20, 7  ;;  %p777_p5 = scmp.ge.s32.totalorder %s1259_s18, 1 }
   0x9   : > { %p1324_p4 = por %p1605_p1, %p41_p0  ;;  %p141_p7 = scmp.lt.s32.totalorder %s1259_s18, 9 }
   0xa   : > { %p1329_p6 = por %p134_p3, %p41_p0  ;;  %s1261_s24 = smov [#allocation5]  }
   0xb   : > { %s1608_s21 = scalar_select %p1324_p4, 1, 0 }
   0xc   : > { %s1609_s22 = scalar_select %p1329_p6, 1, 0 }
   0xd   : > { %p1334_p8 = pnand %p777_p5, %p141_p7  ;;  %s153_s25 = sshll.u32 %s1261_s24, 4  ;;  %s154_s25 = int_to_ptr.vmem [resolvable:$true] %s153_s25 }
   0xe   : > { %s1262_s27 = smov [#allocation7]   ;;  %s1103_s5 = scalar_lea.hbm %s1601_s1, 2048 }
   0xf   : > { %s1610_s23 = scalar_select %p1334_p8, 1, 0 }
  0x10   : > { %p1012_p9 = pneg %p1334_p8  ;;  %s166_s28 = sshll.u32 %s1262_s27, 4  ;;  %s1346_s28 = int_to_ptr.vmem [resolvable:$true] %s166_s28 }
  0x11   : > { %p1104_p11 = scmp.ne.s32.totalorder %s1601_s1, %s1103_s5  ;;  %p1110_p3 = scmp.lt.u32.totalorder %s1103_s5, %s1601_s1 }
  0x12   : > { %p1342_p10 = pnand %p1012_p9, %p1605_p1 }
  0x14   : > { %p1105_p12 = pneg %p1342_p10 }
  0x16   : > { %p1106_p13 = pnand %p1105_p12, %p1104_p11 }
  0x18   : > { %p1107_p0 = pneg %p1106_p13 }
  0x1a   : > { %p1112_p5 = pnand %p1110_p3, %p1107_p0 }
  0x1c   : > { %1115 = shalt.err (!%p1112_p5)
}
  0x1d   : > { %s1116_s10 = scalar_lea.vmem %s154_s25, 2048  ;;  %p1124_p2 = scmp.lt.s32.totalorder %s154_s25, %s154_s25 }
  0x1e   : > { %p1117_p7 = scmp.ne.s32.totalorder %s154_s25, %s1116_s10  ;;  %p1125_p6 = scmp.lt.s32.totalorder %s1116_s10, %s1116_s10 }
  0x20   : > { %p1119_p9 = pnand %p1117_p7, %p1105_p12  ;;  %p1126_p4 = por %p1125_p6, %p1124_p2 }
  0x22   : > { %p1120_p1 = pneg %p1119_p9 }
  0x24   : > { %p1127_p8 = pnand %p1126_p4, %p1120_p1 }
  0x26   : > { %1130 = shalt.err (!%p1127_p8)
}
  0x27   : > { %s1263_s11 = smov 128   ;;  %s1264_s12 = smov 8  }
  0x28   : > { %1015 = dma.hbm_to_vmem [thread:$0]  (!%p1342_p10), %s1601_s1, 2048, %s154_s25, [#allocation6], %s1263_s11, %s1263_s11, %s1264_s12  }
  0x29   : > { %s1131_s27 = scalar_lea.hbm %s1602_s2, 2048 }
  0x2a   : > { %p1132_p1 = scmp.ne.s32.totalorder %s1602_s2, %s1131_s27  ;;  %p1138_p6 = scmp.lt.u32.totalorder %s1131_s27, %s1602_s2 }
  0x2c   : > { %p1134_p2 = pnand %p1132_p1, %p1105_p12 }
  0x2e   : > { %p1135_p4 = pneg %p1134_p2 }
  0x30   : > { %p1140_p8 = pnand %p1138_p6, %p1135_p4 }
  0x32   : > { %1143 = shalt.err (!%p1140_p8)
}
  0x33   : > { %s1144_s25 = scalar_lea.vmem %s1346_s28, 2048  ;;  %p1152_p3 = scmp.lt.s32.totalorder %s1346_s28, %s1346_s28 }
  0x34   : > { %p1145_p11 = scmp.ne.s32.totalorder %s1346_s28, %s1144_s25  ;;  %p1153_p5 = scmp.lt.s32.totalorder %s1144_s25, %s1144_s25 }
  0x36   : > { %p1147_p13 = pnand %p1145_p11, %p1105_p12  ;;  %p1154_p7 = por %p1153_p5, %p1152_p3 }
  0x38   : > { %p1148_p0 = pneg %p1147_p13 }
  0x3a   : > { %p1155_p9 = pnand %p1154_p7, %p1148_p0 }
  0x3c   : > { %1158 = shalt.err (!%p1155_p9)
}
  0x3d   : > { %1018 = dma.hbm_to_vmem [thread:$0]  (!%p1342_p10), %s1602_s2, 2048, %s1346_s28, [#allocation6], %s1263_s11, %s1263_s11, %s1264_s12  }
  0x3e   : > { %s1402_s26 = sadd.s32 1, %s1259_s18   ;;  %s28_s9 = sadd.s32 1, %s1255_s17 }
  0x3f   : > { %s25_s10 = ssub.s32 %s1259_s18, %s1402_s26  ;;  %p35_p12 = scmp.ne.s32.totalorder %s1255_s17, %s1251_s16 }
  0x40   : > { %p26_p1 = scmp.eq.s32.totalorder %s25_s10, 0  ;;  %p36_p2 = scmp.eq.s32.totalorder %s1259_s18, 0 }
  0x41   : > { %p1612_p4 = scmp.eq.s32.totalorder %s1315_s19, 7  ;;  %p1029_p8 = scmp.lt.s32.totalorder %s1259_s18, 8 }
  0x42   : > { %s1418_s14 = scalar_select %p26_p1, %s1255_s17, %s28_s9  }
  0x43   : > { %p1412_p6 = por %p1612_p4, %p35_p12  ;;  %p37_p11 = por %p36_p2, %p35_p12 }
  0x44   : > { %s183_s20 = sand.u32 1, %s1255_s17   ;;  %s798_s28 = sshll.u32 %s1259_s18, 10 }
  0x45   : > { %s781_s24 = sshll.u32 %s183_s20, 6  ;;  %s1425_s30 = scalar_lea.hbm %s1600_s0, %s798_s28 }
  0x46   : > { %s187_s5 = scalar_lea.vmem [#allocation2], %s781_s24  ;;  %p1429_p10 = pnand %p1029_p8, %p37_p11 }
  0x47   : > { %s194_s6 = sshll.u32 %s187_s5, 4  ;;  %s1433_s7 = scalar_lea.sflag [#allocation3], %s183_s20  ;;  %s1427_s6 = int_to_ptr.vmem [resolvable:$true] %s194_s6 }
  0x48   : > { %s1159_s8 = scalar_lea.hbm %s1425_s30, 1024  ;;  %p1161_p0 = pneg %p1429_p10 }
  0x49   : > { %p1160_p13 = scmp.ne.s32.totalorder %s1425_s30, %s1159_s8  ;;  %s1164_s24 = scalar_lea.hbm %s1600_s0, 8192 }
  0x4a   : > { %p1165_p7 = scmp.lt.u32.totalorder %s1425_s30, %s1600_s0  ;;  %p1166_p9 = scmp.lt.u32.totalorder %s1164_s24, %s1159_s8 }
  0x4b   : > { %p1162_p3 = pnand %p1161_p0, %p1160_p13  ;;  %p1168_p1 = scmp.lt.u32.totalorder %s1159_s8, %s1425_s30 }
  0x4c   : > { %p1167_p12 = por %p1166_p9, %p1165_p7 }
  0x4d   : > { %p1163_p5 = pneg %p1162_p3 }
  0x4e   : > { %p1169_p2 = por %p1168_p1, %p1167_p12 }
  0x50   : > { %p1170_p4 = pnand %p1169_p2, %p1163_p5 }
  0x52   : > { %1173 = shalt.err (!%p1170_p4)
}
  0x53   : > { %s1174_s20 = scalar_lea.vmem %s1427_s6, 1024  ;;  %s1265_s29 = smov [#allocation2]  }
  0x54   : > { %p1175_p8 = scmp.ne.s32.totalorder %s1427_s6, %s1174_s20  ;;  %s1179_s5 = sshll.u32 %s1265_s29, 4  ;;  %s1180_s5 = int_to_ptr.vmem [resolvable:$false] %s1179_s5 }
  0x55   : > { %s1181_s9 = scalar_lea.vmem %s1180_s5, 2048  ;;  %p1182_p3 = scmp.lt.s32.totalorder %s1427_s6, %s1180_s5 }
  0x56   : > { %p1177_p11 = pnand %p1175_p8, %p1161_p0  ;;  %p1183_p7 = scmp.lt.s32.totalorder %s1181_s9, %s1174_s20 }
  0x58   : > { %p1178_p13 = pneg %p1177_p11  ;;  %p1184_p9 = por %p1183_p7, %p1182_p3 }
  0x5a   : > { %p1185_p12 = pnand %p1184_p9, %p1178_p13 }
  0x5c   : > { %1188 = shalt.err (!%p1185_p12)
}
  0x5d   : > { %1022 = dma.hbm_to_vmem [thread:$0]  (!%p1429_p10), %s1425_s30, 1024, %s1427_s6, %s1433_s7, %s1263_s11, %s1263_s11, %s1264_s12  }
  0x5e   : > { %p1615_p0 = scmp.ne.s32.totalorder %s1610_s23, 0 }
  0x5f   : > { %s1467_s8 = sand.u32 (!%p1615_p0), 1, %s1251_s16   ;;  %p1616_p5 = scmp.ne.s32.totalorder (!%p1615_p0), %s1608_s21, 0 }
  0x60   : > { %206 = sbr.rel (%p1615_p0) target bundleno = 932 (0x3a4), region = 36  ;;  %s785_s10 = sshll.u32 (!%p1615_p0), %s1467_s8, 6 }
  0x61   : > { %s209_s24 = scalar_lea.sflag (!%p1615_p0), [#allocation3], %s1467_s8  ;;  %s1473_s25 = scalar_lea.vmem (!%p1615_p0), [#allocation2], %s785_s10 }
  0x67   : > { %1234 = dma.done.wait (%p1616_p5), %s209_s24, 1024  }
  0x68   : > { %1236 = vsyncadd (%p1616_p5), %s209_s24, 4294966272  ;;  %p1617_p10 = scmp.eq.s32.totalorder %s1315_s19, 0 }
  0x6a   : > { %1238 = dma.done.wait (%p1617_p10), [#allocation6], 4096   ;;  %p1618_p1 = pmov %p1617_p10 }
  0x6b   : > { %v259_v0 = vld [vmem:[#allocation5] sm:$0xff]  ;;  %v260_v1 = vld [vmem:[#allocation5 + $0x8] sm:$0xff]  ;;  %v261_v2 = vld [vmem:[#allocation5 + $0x10] sm:$0xff]  ;;  %s1535_s27 = scalar_lea.vmem [#allocation8], %s785_s10  ;;  %s799_s20 = sshll.u32 %s1315_s19, 10 }
  0x6c   : > { %1240 = vsyncadd (%p1618_p1), [#allocation6], 4294963200  ;;  %v936_v3 = vpack.c.bf16 %v260_v1, %v259_v0  ;;  %v262_v4 = vld [vmem:[#allocation5 + $0x18] sm:$0xff]  ;;  %v263_v6 = vld [vmem:[#allocation5 + $0x20] sm:$0xff]  ;;  %s684_s29 = sshll.u32 %s1535_s27, 4  ;;  %s1553_s10 = scalar_lea.hbm %s1604_s4, %s799_s20  ;;  %s1555_s29 = int_to_ptr.vmem [resolvable:$true] %s684_s29 }
  0x6d   : > { %v940_v5 = vpack.c.bf16 %v262_v4, %v261_v2  ;;  %v264_v7 = vld [vmem:[#allocation5 + $0x28] sm:$0xff]  ;;  %v251_v9 = vld [vmem:[%s1473_s25] sm:$0xff]  ;;  %v265_v10 = vld [vmem:[#allocation5 + $0x30] sm:$0xff]  ;;  %s671_s19 = scalar_lea.sflag [#allocation4], %s1467_s8  ;;  %s1189_s24 = scalar_lea.vmem %s1555_s29, 1024 }
  0x6e   : > { %937 = vmatprep.subr.bf16.mxu0 %v936_v3  ;;  %v944_v8 = vpack.c.bf16 %v264_v7, %v263_v6  ;;  %v266_v11 = vld [vmem:[#allocation5 + $0x38] sm:$0xff]  ;;  %880 = vmatprep.mubr.f32.mxu0 %v251_v9  ;;  %v424_v12 = vld [vmem:[#allocation7] sm:$0xff]  ;;  %v425_v13 = vld [vmem:[#allocation7 + $0x8] sm:$0xff]  ;;  %p1190_p2 = scmp.ne.s32.totalorder %s1555_s29, %s1189_s24 }
  0x6f   : > { %939 = vmatpush3.bf16.msra.mxu0 %v936_v3  ;;  %v426_v14 = vld [vmem:[#allocation7 + $0x10] sm:$0xff]  ;;  %v948_v15 = vpack.c.bf16 %v266_v11, %v265_v10  ;;  %v267_v16 = vld [vmem:[#allocation5 + $0x40] sm:$0xff]  ;;  %v968_v17 = vpack.c.bf16 %v425_v13, %v424_v12  ;;  %v427_v18 = vld [vmem:[#allocation7 + $0x18] sm:$0xff] }
  0x70   : > { %941 = vmatprep.subr.bf16.mxu0 %v940_v5  ;;  %v268_v19 = vld [vmem:[#allocation5 + $0x48] sm:$0xff]  ;;  %v972_v20 = vpack.c.bf16 %v427_v18, %v426_v14  ;;  %v428_v21 = vld [vmem:[#allocation7 + $0x20] sm:$0xff]  ;;  %v269_v25 = vld [vmem:[#allocation5 + $0x50] sm:$0xff]  ;;  %p1191_p4 = pnand %p1190_p2, %p1412_p6 }
  0x71   : > { %v429_v22 = vld [vmem:[#allocation7 + $0x28] sm:$0xff]  ;;  %969 = vmatprep.subr.bf16.mxu1 %v968_v17  ;;  %v952_v23 = vpack.c.bf16 %v268_v19, %v267_v16  ;;  %v270_v26 = vld [vmem:[#allocation5 + $0x58] sm:$0xff]  ;;  %v271_v28 = vld [vmem:[#allocation5 + $0x60] sm:$0xff] }
  0x72   : > { %971 = vmatpush3.bf16.msra.mxu1 %v968_v17  ;;  %v976_v24 = vpack.c.bf16 %v429_v22, %v428_v21  ;;  %v956_v27 = vpack.c.bf16 %v270_v26, %v269_v25  ;;  %v272_v29 = vld [vmem:[#allocation5 + $0x68] sm:$0xff]  ;;  %v273_v31 = vld [vmem:[#allocation5 + $0x70] sm:$0xff]  ;;  %v274_v32 = vld [vmem:[#allocation5 + $0x78] sm:$0xff]  ;;  %p1192_p8 = pneg %p1191_p4 }
  0x73   : > { %943 = vmatpush3.bf16.msra.mxu0 %v940_v5  ;;  %973 = vmatprep.subr.bf16.mxu1 %v972_v20  ;;  %v960_v30 = vpack.c.bf16 %v272_v29, %v271_v28  ;;  %v964_v33 = vpack.c.bf16 %v274_v32, %v273_v31  ;;  %v252_v34 = vld [vmem:[%s1473_s25 + $0x8] sm:$0xff]  ;;  %v253_v35 = vld [vmem:[%s1473_s25 + $0x10] sm:$0xff]  ;;  %v254_v36 = vld [vmem:[%s1473_s25 + $0x18] sm:$0xff] }
  0x74   : > { %945 = vmatprep.subr.bf16.mxu0 %v944_v8  ;;  %v255_v37 = vld [vmem:[%s1473_s25 + $0x20] sm:$0xff]  ;;  %v256_v38 = vld [vmem:[%s1473_s25 + $0x28] sm:$0xff]  ;;  %v257_v39 = vld [vmem:[%s1473_s25 + $0x30] sm:$0xff] }
  0x75   : > { %v258_v40 = vld [vmem:[%s1473_s25 + $0x38] sm:$0xff]  ;;  %v430_v41 = vld [vmem:[#allocation7 + $0x30] sm:$0xff]  ;;  %v432_v44 = vld [vmem:[#allocation7 + $0x40] sm:$0xff]  ;;  %s1266_s25 = smov [#allocation8]  }
  0x76   : > { %975 = vmatpush3.bf16.msra.mxu1 %v972_v20  ;;  %v431_v42 = vld [vmem:[#allocation7 + $0x38] sm:$0xff]  ;;  %v433_v45 = vld [vmem:[#allocation7 + $0x48] sm:$0xff]  ;;  %v434_v47 = vld [vmem:[#allocation7 + $0x50] sm:$0xff]  ;;  %s1193_s21 = sshll.u32 %s1266_s25, 4  ;;  %s1194_s21 = int_to_ptr.vmem [resolvable:$false] %s1193_s21 }
  0x77   : > { %947 = vmatpush3.bf16.msra.mxu0 %v944_v8  ;;  %977 = vmatprep.subr.bf16.mxu1 %v976_v24  ;;  %v980_v43 = vpack.c.bf16 %v431_v42, %v430_v41  ;;  %v984_v46 = vpack.c.bf16 %v433_v45, %v432_v44  ;;  %v435_v48 = vld [vmem:[#allocation7 + $0x58] sm:$0xff]  ;;  %v436_v50 = vld [vmem:[#allocation7 + $0x60] sm:$0xff]  ;;  %v437_v51 = vld [vmem:[#allocation7 + $0x68] sm:$0xff]  ;;  %s1195_s23 = scalar_lea.vmem %s1194_s21, 2048  ;;  %p1196_p11 = scmp.lt.s32.totalorder %s1555_s29, %s1194_s21 }
  0x78   : > { %949 = vmatprep.subr.bf16.mxu0 %v948_v15  ;;  %v988_v49 = vpack.c.bf16 %v435_v48, %v434_v47  ;;  %v992_v52 = vpack.c.bf16 %v437_v51, %v436_v50  ;;  %v438_v53 = vld [vmem:[#allocation7 + $0x70] sm:$0xff]  ;;  %v439_v54 = vld [vmem:[#allocation7 + $0x78] sm:$0xff]  ;;  %v789_v56 = vld [vmem:[%s1603_s3] ss:$0 sm:$0xff]  ;;  %p1197_p13 = scmp.lt.s32.totalorder %s1195_s23, %s1189_s24 }
  0x79   : > { %v996_v55 = vpack.c.bf16 %v439_v54, %v438_v53 }
  0x7a   : > { %979 = vmatpush3.bf16.msra.mxu1 %v976_v24  ;;  %p1198_p3 = por %p1197_p13, %p1196_p11 }
  0x7b   : > { %951 = vmatpush3.bf16.msra.mxu0 %v948_v15  ;;  %981 = vmatprep.subr.bf16.mxu1 %v980_v43 }
  0x7c   : > { %953 = vmatprep.subr.bf16.mxu0 %v952_v23  ;;  %p1199_p7 = pnand %p1198_p3, %p1192_p8 }
  0x7e   : > { %983 = vmatpush3.bf16.msra.mxu1 %v980_v43 }
  0x7f   : > { %955 = vmatpush3.bf16.msra.mxu0 %v952_v23  ;;  %985 = vmatprep.subr.bf16.mxu1 %v984_v46 }
  0x80   : > { %957 = vmatprep.subr.bf16.mxu0 %v956_v27 }
  0x82   : > { %987 = vmatpush3.bf16.msra.mxu1 %v984_v46 }
  0x83   : > { %959 = vmatpush3.bf16.msra.mxu0 %v956_v27  ;;  %989 = vmatprep.subr.bf16.mxu1 %v988_v49 }
  0x84   : > { %961 = vmatprep.subr.bf16.mxu0 %v960_v30 }
  0x86   : > { %991 = vmatpush3.bf16.msra.mxu1 %v988_v49  ;;  %v790_v49 = vld [vmem:[%s1603_s3 + $0x1] ss:$0 sm:$0xff] }
  0x87   : > { %963 = vmatpush3.bf16.msra.mxu0 %v960_v30  ;;  %993 = vmatprep.subr.bf16.mxu1 %v992_v52 }
  0x88   : > { %965 = vmatprep.subr.bf16.mxu0 %v964_v33 }
  0x8a   : > { %995 = vmatpush3.bf16.msra.mxu1 %v992_v52 }
  0x8b   : > { %967 = vmatpush3.bf16.msra.mxu0 %v964_v33  ;;  %997 = vmatprep.subr.bf16.mxu1 %v996_v55 }
  0x8e   : > { %881 = vmatmul.mubr.f32.vlgmr.msra.gmra.mrb[0].mxu0 %v252_v34  ;;  %999 = vmatpush3.bf16.msra.mxu1 %v996_v55 }
  0x8f   : > { %883 = vmatprep.mubr.f32.mxu0 %v253_v35 }
  0x92   : > { %884 = vmatmul.mubr.f32.gmra.mrb[2].mxu0 %v254_v36 }
  0x93   : > { %886 = vmatprep.mubr.f32.mxu0 %v255_v37 }
  0x96   : > { %887 = vmatmul.mubr.f32.gmra.mrb[4].mxu0 %v256_v38 }
  0x97   : > { %889 = vmatprep.mubr.f32.mxu0 %v257_v39 }
  0x9a   : > { %890 = vmatmul.mubr.f32.gmra.mrb[6].mxu0 %v258_v40 }
 0x161   : > { %v882_v57 = vpop.f32.mrb[0].mxu0 }
 0x162   : > { %v351_v58 = vadd.f32 %v882_v57, %v789_v56  ;;  %v345_v59 = vpop.f32.mrb[1].mxu0 }
 0x163   : > { %v346_v60 = vadd.f32 %v789_v56, %v345_v59 }
 0x164   : > { %v393_v61 = vmul.f32 0.70710677, %v351_v58  ;;  %v385_v22 = vmul.f32 0.5, %v351_v58 }
 0x165   : > { %v392_v62 = vmul.f32 0.70710677, %v346_v60  ;;  %v885_v63 = vpop.f32.mrb[2].mxu0  ;;  %v384_v20 = vmul.f32 0.5, %v346_v60 }
 0x166   : > { %1071 = verf.f32 %v393_v61  ;;  %v361_v0 = vadd.f32 %v885_v63, %v789_v56  ;;  %v355_v1 = vpop.f32.mrb[3].mxu0 }
 0x167   : > { %1073 = verf.f32 %v392_v62  ;;  %v356_v2 = vadd.f32 %v789_v56, %v355_v1 }
 0x168   : > { %v395_v3 = vmul.f32 0.70710677, %v361_v0  ;;  %v387_v30 = vmul.f32 0.5, %v361_v0 }
 0x169   : > { %v394_v4 = vmul.f32 0.70710677, %v356_v2  ;;  %v888_v5 = vpop.f32.mrb[4].mxu0  ;;  %v386_v28 = vmul.f32 0.5, %v356_v2 }
 0x16a   : > { %1075 = verf.f32 %v395_v3  ;;  %v371_v6 = vadd.f32 %v888_v5, %v789_v56  ;;  %v365_v7 = vpop.f32.mrb[5].mxu0 }
 0x16b   : > { %1077 = verf.f32 %v394_v4  ;;  %v366_v8 = vadd.f32 %v789_v56, %v365_v7 }
 0x16c   : > { %v397_v9 = vmul.f32 0.70710677, %v371_v6  ;;  %v389_v38 = vmul.f32 0.5, %v371_v6 }
 0x16d   : > { %v396_v10 = vmul.f32 0.70710677, %v366_v8  ;;  %v891_v11 = vpop.f32.mrb[6].mxu0  ;;  %v388_v36 = vmul.f32 0.5, %v366_v8 }
 0x16e   : > { %1079 = verf.f32 %v397_v9  ;;  %v381_v12 = vadd.f32 %v891_v11, %v789_v56  ;;  %v375_v13 = vpop.f32.mrb[7].mxu0 }
 0x16f   : > { %1081 = verf.f32 %v396_v10  ;;  %v376_v14 = vadd.f32 %v789_v56, %v375_v13 }
 0x170   : > { %v1072_v15 = vpop.eup %1071  ;;  %v399_v16 = vmul.f32 0.70710677, %v381_v12  ;;  %v391_v46 = vmul.f32 0.5, %v381_v12 }
 0x171   : > { %v1074_v17 = vpop.eup %1073  ;;  %v409_v18 = vadd.f32 1.0, %v1072_v15  ;;  %v398_v19 = vmul.f32 0.70710677, %v376_v14  ;;  %v390_v44 = vmul.f32 0.5, %v376_v14 }
 0x172   : > { %1083 = verf.f32 %v399_v16  ;;  %v408_v21 = vadd.f32 1.0, %v1074_v17 }
 0x173   : > { %1085 = verf.f32 %v398_v19  ;;  %v417_v27 = vmul.f32 %v409_v18, %v385_v22 }
 0x174   : > { %v1076_v23 = vpop.eup %1075  ;;  %v416_v24 = vmul.f32 %v408_v21, %v384_v20 }
 0x175   : > { %v1078_v25 = vpop.eup %1077  ;;  %v411_v26 = vadd.f32 1.0, %v1076_v23 }
 0x176   : > { %v410_v29 = vadd.f32 1.0, %v1078_v25  ;;  %924 = vmatprep.mubr.f32.mxu1 %v416_v24 }
 0x177   : > { %925 = vmatmul.mubr.f32.vlgmr.msra.gmra.mrb[0].mxu1 %v417_v27  ;;  %v419_v35 = vmul.f32 %v411_v26, %v387_v30 }
 0x178   : > { %v1080_v31 = vpop.eup %1079  ;;  %v418_v32 = vmul.f32 %v410_v29, %v386_v28 }
 0x179   : > { %v1082_v33 = vpop.eup %1081  ;;  %v413_v34 = vadd.f32 1.0, %v1080_v31 }
 0x17a   : > { %v412_v37 = vadd.f32 1.0, %v1082_v33  ;;  %927 = vmatprep.mubr.f32.mxu1 %v418_v32 }
 0x17b   : > { %928 = vmatmul.mubr.f32.gmra.mrb[2].mxu1 %v419_v35  ;;  %v421_v43 = vmul.f32 %v413_v34, %v389_v38 }
 0x17c   : > { %v1084_v39 = vpop.eup %1083  ;;  %v420_v40 = vmul.f32 %v412_v37, %v388_v36 }
 0x17d   : > { %v1086_v41 = vpop.eup %1085  ;;  %v415_v42 = vadd.f32 1.0, %v1084_v39 }
 0x17e   : > { %v414_v45 = vadd.f32 1.0, %v1086_v41  ;;  %930 = vmatprep.mubr.f32.mxu1 %v420_v40 }
 0x17f   : > { %931 = vmatmul.mubr.f32.gmra.mrb[4].mxu1 %v421_v43  ;;  %v423_v48 = vmul.f32 %v415_v42, %v391_v46 }
 0x180   : > { %v422_v47 = vmul.f32 %v414_v45, %v390_v44 }
 0x182   : > { %933 = vmatprep.mubr.f32.mxu1 %v422_v47 }
 0x183   : > { %934 = vmatmul.mubr.f32.gmra.mrb[6].mxu1 %v423_v48 }
 0x24a   : > { %v926_v50 = vpop.f32.mrb[0].mxu1 }
 0x24b   : > { %v516_v51 = vadd.f32 %v926_v50, %v790_v49  ;;  %v510_v52 = vpop.f32.mrb[1].mxu1 }
 0x24c   : > { %v511_v54 = vadd.f32 %v790_v49, %v510_v52 }
 0x24d   : > { %551 = vadd.xlane.f32.xlu0 %v516_v51 }
 0x24e   : > { %v929_v53 = vpop.f32.mrb[2].mxu1 }
 0x24f   : > { %v526_v55 = vadd.f32 %v929_v53, %v790_v49  ;;  %v520_v56 = vpop.f32.mrb[3].mxu1 }
 0x250   : > { %v521_v58 = vadd.f32 %v790_v49, %v520_v56 }
 0x251   : > { %555 = vadd.xlane.f32.xlu1 %v526_v55  ;;  %549 = vadd.xlane.f32.xlu0 %v511_v54 }
 0x252   : > { %v932_v57 = vpop.f32.mrb[4].mxu1 }
 0x253   : > { %v530_v59 = vpop.f32.mrb[5].mxu1  ;;  %v536_v62 = vadd.f32 %v932_v57, %v790_v49  ;;  %v792_v57 = vld [vmem:[%s1603_s3 + $0x3] ss:$0 sm:$0xff] }
 0x254   : > { %v531_v60 = vadd.f32 %v790_v49, %v530_v59 }
 0x255   : > { %553 = vadd.xlane.f32.xlu1 %v521_v58 }
 0x256   : > { %v935_v61 = vpop.f32.mrb[6].mxu1  ;;  %557 = vadd.xlane.f32.xlu0 %v531_v60 }
 0x257   : > { %v540_v63 = vpop.f32.mrb[7].mxu1  ;;  %v546_v1 = vadd.f32 %v935_v61, %v790_v49 }
 0x258   : > { %v541_v0 = vadd.f32 %v790_v49, %v540_v63 }
 0x259   : > { %559 = vadd.xlane.f32.xlu1 %v536_v62 }
 0x25a   : > { %561 = vadd.xlane.f32.xlu0 %v541_v0 }
 0x25d   : > { %563 = vadd.xlane.f32.xlu1 %v546_v1 }
 0x2da   : > { %v552_v2 = vpop.xlane.xlu0 %551 }
 0x2db   : > { %v567_v3 = vmul.f32 0.0078125, %v552_v2 }
 0x2dd   : > { %v575_v4 = vsub.f32 %v516_v51, %v567_v3  ;;  %v791_v51 = vld [vmem:[%s1603_s3 + $0x2] ss:$0 sm:$0xff] }
 0x2de   : > { %v556_v5 = vpop.xlane.xlu1 %555  ;;  %v550_v6 = vpop.xlane.xlu0 %549 }
 0x2df   : > { %v569_v7 = vmul.f32 0.0078125, %v556_v5  ;;  %v566_v8 = vmul.f32 0.0078125, %v550_v6  ;;  %v583_v9 = vmul.f32 %v575_v4, %v575_v4 }
 0x2e1   : > { %v1497_v10 = vsub.f32 %v526_v55, %v569_v7  ;;  %v1499_v11 = vsub.f32 %v511_v54, %v566_v8  ;;  %592 = vadd.xlane.f32.xlu1 %v583_v9 }
 0x2e2   : > { %v554_v12 = vpop.xlane.xlu1 %553 }
 0x2e3   : > { %v568_v13 = vmul.f32 0.0078125, %v554_v12  ;;  %v558_v14 = vpop.xlane.xlu0 %557  ;;  %v585_v15 = vmul.f32 %v1497_v10, %v1497_v10  ;;  %v582_v16 = vmul.f32 %v1499_v11, %v1499_v11 }
 0x2e4   : > { %v570_v17 = vmul.f32 0.0078125, %v558_v14 }
 0x2e5   : > { %v1505_v18 = vsub.f32 %v521_v58, %v568_v13  ;;  %596 = vadd.xlane.f32.xlu1 %v585_v15  ;;  %590 = vadd.xlane.f32.xlu0 %v582_v16 }
 0x2e6   : > { %v560_v19 = vpop.xlane.xlu1 %559  ;;  %v1507_v20 = vsub.f32 %v531_v60, %v570_v17 }
 0x2e7   : > { %v571_v21 = vmul.f32 0.0078125, %v560_v19  ;;  %v562_v22 = vpop.xlane.xlu0 %561  ;;  %v584_v23 = vmul.f32 %v1505_v18, %v1505_v18 }
 0x2e8   : > { %v572_v24 = vmul.f32 0.0078125, %v562_v22  ;;  %v586_v30 = vmul.f32 %v1507_v20, %v1507_v20 }
 0x2e9   : > { %v1511_v25 = vsub.f32 %v536_v62, %v571_v21  ;;  %594 = vadd.xlane.f32.xlu0 %v584_v23 }
 0x2ea   : > { %v564_v26 = vpop.xlane.xlu1 %563  ;;  %v1513_v27 = vsub.f32 %v541_v0, %v572_v24 }
 0x2eb   : > { %v573_v28 = vmul.f32 0.0078125, %v564_v26  ;;  %v587_v29 = vmul.f32 %v1511_v25, %v1511_v25 }
 0x2ec   : > { %v588_v33 = vmul.f32 %v1513_v27, %v1513_v27 }
 0x2ed   : > { %v1519_v31 = vsub.f32 %v546_v1, %v573_v28  ;;  %600 = vadd.xlane.f32.xlu1 %v587_v29  ;;  %598 = vadd.xlane.f32.xlu0 %v586_v30 }
 0x2ef   : > { %v589_v32 = vmul.f32 %v1519_v31, %v1519_v31 }
 0x2f1   : > { %604 = vadd.xlane.f32.xlu1 %v589_v32  ;;  %602 = vadd.xlane.f32.xlu0 %v588_v33 }
 0x36e   : > { %v593_v34 = vpop.xlane.xlu1 %592 }
 0x36f   : > { %v607_v35 = vmul.f32 0.0078125, %v593_v34 }
 0x371   : > { %v615_v36 = vadd.f32 1e-05, %v607_v35 }
 0x372   : > { %v597_v37 = vpop.xlane.xlu1 %596  ;;  %v591_v38 = vpop.xlane.xlu0 %590 }
 0x373   : > { %1087 = vrsqrt.f32 %v615_v36  ;;  %v609_v39 = vmul.f32 0.0078125, %v597_v37  ;;  %v606_v40 = vmul.f32 0.0078125, %v591_v38 }
 0x375   : > { %v617_v41 = vadd.f32 1e-05, %v609_v39  ;;  %v614_v42 = vadd.f32 1e-05, %v606_v40 }
 0x376   : > { %v595_v43 = vpop.xlane.xlu0 %594 }
 0x377   : > { %1089 = vrsqrt.f32 %v617_v41  ;;  %v608_v44 = vmul.f32 0.0078125, %v595_v43 }
 0x378   : > { %1091 = vrsqrt.f32 %v614_v42 }
 0x379   : > { %v616_v45 = vadd.f32 1e-05, %v608_v44 }
 0x37a   : > { %v601_v46 = vpop.xlane.xlu1 %600  ;;  %v599_v47 = vpop.xlane.xlu0 %598 }
 0x37b   : > { %1093 = vrsqrt.f32 %v616_v45  ;;  %v611_v48 = vmul.f32 0.0078125, %v601_v46  ;;  %v610_v49 = vmul.f32 0.0078125, %v599_v47 }
 0x37d   : > { %v1088_v50 = vpop.eup %1087  ;;  %v619_v52 = vadd.f32 1e-05, %v611_v48  ;;  %v618_v53 = vadd.f32 1e-05, %v610_v49 }
 0x37e   : > { %v631_v54 = vmul.f32 %v1088_v50, %v575_v4  ;;  %v605_v55 = vpop.xlane.xlu1 %604  ;;  %v603_v56 = vpop.xlane.xlu0 %602 }
 0x37f   : > { %1095 = vrsqrt.f32 %v619_v52  ;;  %v613_v58 = vmul.f32 0.0078125, %v605_v55  ;;  %v612_v59 = vmul.f32 0.0078125, %v603_v56 }
 0x380   : > { %v643_v60 = vmul.f32 %v791_v51, %v631_v54  ;;  %1097 = vrsqrt.f32 %v618_v53 }
 0x381   : > { %v1090_v61 = vpop.eup %1089  ;;  %v621_v62 = vadd.f32 1e-05, %v613_v58  ;;  %v620_v63 = vadd.f32 1e-05, %v612_v59 }
 0x382   : > { %v1092_v0 = vpop.eup %1091  ;;  %v655_v1 = vadd.f32 %v792_v57, %v643_v60  ;;  %v633_v2 = vmul.f32 %v1090_v61, %v1497_v10 }
 0x383   : > { %v630_v3 = vmul.f32 %v1092_v0, %v1499_v11  ;;  %1099 = vrsqrt.f32 %v621_v62 }
 0x384   : > { %663 = vst [vmem:[%s1535_s27 + $0x8] sm:$0xff] %v655_v1  ;;  %v645_v4 = vmul.f32 %v791_v51, %v633_v2  ;;  %1101 = vrsqrt.f32 %v620_v63 }
 0x385   : > { %v1094_v5 = vpop.eup %1093  ;;  %v642_v6 = vmul.f32 %v791_v51, %v630_v3 }
 0x386   : > { %v657_v7 = vadd.f32 %v792_v57, %v645_v4  ;;  %v632_v8 = vmul.f32 %v1094_v5, %v1505_v18 }
 0x387   : > { %v654_v9 = vadd.f32 %v792_v57, %v642_v6 }
 0x388   : > { %665 = vst [vmem:[%s1535_s27 + $0x18] sm:$0xff] %v657_v7  ;;  %v644_v10 = vmul.f32 %v791_v51, %v632_v8 }
 0x389   : > { %v1096_v11 = vpop.eup %1095  ;;  %662 = vst [vmem:[%s1535_s27] sm:$0xff] %v654_v9 }
 0x38a   : > { %v1098_v12 = vpop.eup %1097  ;;  %v656_v13 = vadd.f32 %v792_v57, %v644_v10  ;;  %v635_v14 = vmul.f32 %v1096_v11, %v1511_v25 }
 0x38b   : > { %v634_v15 = vmul.f32 %v1098_v12, %v1507_v20 }
 0x38c   : > { %664 = vst [vmem:[%s1535_s27 + $0x10] sm:$0xff] %v656_v13  ;;  %v647_v16 = vmul.f32 %v791_v51, %v635_v14 }
 0x38d   : > { %v1100_v17 = vpop.eup %1099  ;;  %v646_v19 = vmul.f32 %v791_v51, %v634_v15 }
 0x38e   : > { %v1102_v18 = vpop.eup %1101  ;;  %v659_v21 = vadd.f32 %v792_v57, %v647_v16  ;;  %v637_v22 = vmul.f32 %v1100_v17, %v1519_v31 }
 0x38f   : > { %v658_v23 = vadd.f32 %v792_v57, %v646_v19  ;;  %v636_v24 = vmul.f32 %v1102_v18, %v1513_v27 }
 0x390   : > { %667 = vst [vmem:[%s1535_s27 + $0x28] sm:$0xff] %v659_v21  ;;  %v649_v25 = vmul.f32 %v791_v51, %v637_v22 }
 0x391   : > { %666 = vst [vmem:[%s1535_s27 + $0x20] sm:$0xff] %v658_v23  ;;  %v648_v20 = vmul.f32 %v791_v51, %v636_v24 }
 0x392   : > { %v661_v26 = vadd.f32 %v792_v57, %v649_v25 }
 0x393   : > { %v660_v28 = vadd.f32 %v792_v57, %v648_v20 }
 0x394   : > { %669 = vst [vmem:[%s1535_s27 + $0x38] sm:$0xff] %v661_v26 }
 0x395   : > { %668 = vst [vmem:[%s1535_s27 + $0x30] sm:$0xff] %v660_v28 }
 0x396   : > { %1202 = shalt.err (!%p1199_p7)
}
 0x397   : > { %s1203_s11 = scalar_lea.hbm %s1553_s10, 1024  ;;  %s1207_s6 = scalar_lea.hbm %s1604_s4, 8192 }
 0x398   : > { %p1204_p9 = scmp.ne.s32.totalorder %s1553_s10, %s1203_s11  ;;  %p1208_p5 = scmp.lt.u32.totalorder %s1553_s10, %s1604_s4 }
 0x399   : > { %p1209_p10 = scmp.lt.u32.totalorder %s1207_s6, %s1203_s11  ;;  %p1211_p2 = scmp.lt.u32.totalorder %s1203_s11, %s1553_s10 }
 0x39a   : > { %p1205_p12 = pnand %p1204_p9, %p1412_p6 }
 0x39b   : > { %p1210_p1 = por %p1209_p10, %p1208_p5 }
 0x39c   : > { %p1206_p0 = pneg %p1205_p12 }
 0x39d   : > { %p1212_p4 = por %p1211_p2, %p1210_p1 }
 0x39f   : > { %p1213_p8 = pnand %p1212_p4, %p1206_p0 }
 0x3a1   : > { %1216 = shalt.err (!%p1213_p8)
}
 0x3a2   : > { %s1267_s27 = smov 128   ;;  %s1268_s20 = smov 8  }
 0x3a3   : > { %1010 = dma.vmem_to_hbm [thread:$0]  (%p1412_p6), %s1555_s29, 1024, %s1553_s10, %s671_s19, %s1267_s27, %s1267_s27, %s1268_s20  }
 0x3a4 PF: > { %p1032_p11 = scmp.ge.s32.totalorder %s1259_s18, 2  ;;  %s699_s5 = sand.u32 1, %s1247_s15  }
 0x3a5   : > { %p1619_p13 = scmp.ne.s32.totalorder %s1609_s22, 0  ;;  %s700_s9 = scalar_lea.sflag [#allocation4], %s699_s5 }
 0x3a7   : > { %p1024_p3 = pnand %p1032_p11, %p1619_p13 }
 0x3a9   : > { %1242 = dma.done.wait (!%p1024_p3), %s700_s9, 1024  }
 0x3aa   : > { %1244 = vsyncadd (!%p1024_p3), %s700_s9, 4294966272  ;;  %p18_p7 = scmp.ge.s32.totalorder %s1402_s26, 10   ;;  %s1620_s15 = smov %s1251_s16 }
 0x3ab   : > { %s1621_s16 = smov %s1255_s17  ;;  %s1622_s17 = smov %s1418_s14 }
 0x3ac   : > { %s1623_s18 = smov %s1402_s26  ;;  %20 = sbr.rel (!%p18_p7) target bundleno = 6 (0x6), region = 89 }
 0x3b3   :  { %705 = vsyncpa [#allocation3], 1 }
 0x3b4   :  { %707 = vsyncpa [#allocation3 + $0x1], 1 }
 0x3b5   :  { %708 = vsyncpa [#allocation6], 1 }
 0x3b6   :  { %709 = vsyncpa [#allocation4], 1 }
 0x3b7   :  { %711 = vsyncpa [#allocation4 + $0x1], 1 }

// kernel: tpu_custom_call.1
= control target key start
LH: loop header
LB: loop body
LE: loop exit
PB: predicated region body
PF: predicated region fallthrough
CT: control target
= control target key end

     0   :  { %9 = vsyncpa [#allocation3], 0  ;;  %s1600_s0 = inlined_call_operand.hbm [shape: f32[512,128], index: 0, kind: input, shape index: {}]   ;;  %s1601_s1 = inlined_call_operand.hbm [shape: f32[128,128], index: 1, kind: input, shape index: {}]   ;;  %s1602_s2 = inlined_call_operand.hbm [shape: f32[128,128], index: 2, kind: input, shape index: {}]   ;;  %s1603_s3 = inlined_call_operand.vmem [shape: f32[8,128], index: 3, kind: input, shape index: {}]   ;;  %s1604_s4 = inlined_call_operand.hbm [shape: f32[512,128], index: 4, kind: output, shape index: {}]  }
   0x1   :  { %11 = vsyncpa [#allocation3 + $0x1], 0 }
   0x2   :  { %12 = vsyncpa [#allocation6], 0 }
   0x3   :  { %13 = vsyncpa [#allocation4], 0 }
   0x4   :  { %15 = vsyncpa [#allocation4 + $0x1], 0  ;;  %s1294_s15 = smov 0   ;;  %s1296_s16 = smov 0  }
   0x5   :  { %s1298_s17 = smov 0   ;;  %s1300_s18 = smov 0  }
   0x6 LB: > { %s1315_s19 = sadd.s32 4294967295, %s1259_s18   ;;  %s776_s20 = sadd.s32 4294967294, %s1259_s18   ;;  %s1259_s18 = sphi %s1300_s18, %s1623_s18   ;;  %s1255_s17 = sphi %s1298_s17, %s1622_s17   ;;  %s1251_s16 = sphi %s1296_s16, %s1621_s16   ;;  %s1247_s15 = sphi %s1294_s15, %s1620_s15  }
   0x7   : > { %p41_p0 = scmp.ne.s32.totalorder %s1251_s16, %s1247_s15  ;;  %p1605_p1 = scmp.eq.s32.totalorder %s1315_s19, 0 }
   0x8   : > { %p134_p3 = scmp.eq.s32.totalorder %s776_s20, 7  ;;  %p777_p5 = scmp.ge.s32.totalorder %s1259_s18, 1 }
   0x9   : > { %p1324_p4 = por %p1605_p1, %p41_p0  ;;  %p141_p7 = scmp.lt.s32.totalorder %s1259_s18, 9 }
   0xa   : > { %p1329_p6 = por %p134_p3, %p41_p0  ;;  %s1261_s24 = smov [#allocation5]  }
   0xb   : > { %s1608_s21 = scalar_select %p1324_p4, 1, 0 }
   0xc   : > { %s1609_s22 = scalar_select %p1329_p6, 1, 0 }
   0xd   : > { %p1334_p8 = pnand %p777_p5, %p141_p7  ;;  %s153_s25 = sshll.u32 %s1261_s24, 4  ;;  %s154_s25 = int_to_ptr.vmem [resolvable:$true] %s153_s25 }
   0xe   : > { %s1262_s27 = smov [#allocation7]   ;;  %s1103_s5 = scalar_lea.hbm %s1601_s1, 2048 }
   0xf   : > { %s1610_s23 = scalar_select %p1334_p8, 1, 0 }
  0x10   : > { %p1012_p9 = pneg %p1334_p8  ;;  %s166_s28 = sshll.u32 %s1262_s27, 4  ;;  %s1346_s28 = int_to_ptr.vmem [resolvable:$true] %s166_s28 }
  0x11   : > { %p1104_p11 = scmp.ne.s32.totalorder %s1601_s1, %s1103_s5  ;;  %p1110_p3 = scmp.lt.u32.totalorder %s1103_s5, %s1601_s1 }
  0x12   : > { %p1342_p10 = pnand %p1012_p9, %p1605_p1 }
  0x14   : > { %p1105_p12 = pneg %p1342_p10 }
  0x16   : > { %p1106_p13 = pnand %p1105_p12, %p1104_p11 }
  0x18   : > { %p1107_p0 = pneg %p1106_p13 }
  0x1a   : > { %p1112_p5 = pnand %p1110_p3, %p1107_p0 }
  0x1c   : > { %1115 = shalt.err (!%p1112_p5)
}
  0x1d   : > { %s1116_s10 = scalar_lea.vmem %s154_s25, 2048  ;;  %p1124_p2 = scmp.lt.s32.totalorder %s154_s25, %s154_s25 }
  0x1e   : > { %p1117_p7 = scmp.ne.s32.totalorder %s154_s25, %s1116_s10  ;;  %p1125_p6 = scmp.lt.s32.totalorder %s1116_s10, %s1116_s10 }
  0x20   : > { %p1119_p9 = pnand %p1117_p7, %p1105_p12  ;;  %p1126_p4 = por %p1125_p6, %p1124_p2 }
  0x22   : > { %p1120_p1 = pneg %p1119_p9 }
  0x24   : > { %p1127_p8 = pnand %p1126_p4, %p1120_p1 }
  0x26   : > { %1130 = shalt.err (!%p1127_p8)
}
  0x27   : > { %s1263_s11 = smov 128   ;;  %s1264_s12 = smov 8  }
  0x28   : > { %1015 = dma.hbm_to_vmem [thread:$0]  (!%p1342_p10), %s1601_s1, 2048, %s154_s25, [#allocation6], %s1263_s11, %s1263_s11, %s1264_s12  }
  0x29   : > { %s1131_s27 = scalar_lea.hbm %s1602_s2, 2048 }
  0x2a   : > { %p1132_p1 = scmp.ne.s32.totalorder %s1602_s2, %s1131_s27  ;;  %p1138_p6 = scmp.lt.u32.totalorder %s1131_s27, %s1602_s2 }
  0x2c   : > { %p1134_p2 = pnand %p1132_p1, %p1105_p12 }
  0x2e   : > { %p1135_p4 = pneg %p1134_p2 }
  0x30   : > { %p1140_p8 = pnand %p1138_p6, %p1135_p4 }
  0x32   : > { %1143 = shalt.err (!%p1140_p8)
}
  0x33   : > { %s1144_s25 = scalar_lea.vmem %s1346_s28, 2048  ;;  %p1152_p3 = scmp.lt.s32.totalorder %s1346_s28, %s1346_s28 }
  0x34   : > { %p1145_p11 = scmp.ne.s32.totalorder %s1346_s28, %s1144_s25  ;;  %p1153_p5 = scmp.lt.s32.totalorder %s1144_s25, %s1144_s25 }
  0x36   : > { %p1147_p13 = pnand %p1145_p11, %p1105_p12  ;;  %p1154_p7 = por %p1153_p5, %p1152_p3 }
  0x38   : > { %p1148_p0 = pneg %p1147_p13 }
  0x3a   : > { %p1155_p9 = pnand %p1154_p7, %p1148_p0 }
  0x3c   : > { %1158 = shalt.err (!%p1155_p9)
}
  0x3d   : > { %1018 = dma.hbm_to_vmem [thread:$0]  (!%p1342_p10), %s1602_s2, 2048, %s1346_s28, [#allocation6], %s1263_s11, %s1263_s11, %s1264_s12  }
  0x3e   : > { %s1402_s26 = sadd.s32 1, %s1259_s18   ;;  %s28_s9 = sadd.s32 1, %s1255_s17 }
  0x3f   : > { %s25_s10 = ssub.s32 %s1259_s18, %s1402_s26  ;;  %p35_p12 = scmp.ne.s32.totalorder %s1255_s17, %s1251_s16 }
  0x40   : > { %p26_p1 = scmp.eq.s32.totalorder %s25_s10, 0  ;;  %p36_p2 = scmp.eq.s32.totalorder %s1259_s18, 0 }
  0x41   : > { %p1612_p4 = scmp.eq.s32.totalorder %s1315_s19, 7  ;;  %p1029_p8 = scmp.lt.s32.totalorder %s1259_s18, 8 }
  0x42   : > { %s1418_s14 = scalar_select %p26_p1, %s1255_s17, %s28_s9  }
  0x43   : > { %p1412_p6 = por %p1612_p4, %p35_p12  ;;  %p37_p11 = por %p36_p2, %p35_p12 }
  0x44   : > { %s183_s20 = sand.u32 1, %s1255_s17   ;;  %s798_s28 = sshll.u32 %s1259_s18, 10 }
  0x45   : > { %s781_s24 = sshll.u32 %s183_s20, 6  ;;  %s1425_s30 = scalar_lea.hbm %s1600_s0, %s798_s28 }
  0x46   : > { %s187_s5 = scalar_lea.vmem [#allocation2], %s781_s24  ;;  %p1429_p10 = pnand %p1029_p8, %p37_p11 }
  0x47   : > { %s194_s6 = sshll.u32 %s187_s5, 4  ;;  %s1433_s7 = scalar_lea.sflag [#allocation3], %s183_s20  ;;  %s1427_s6 = int_to_ptr.vmem [resolvable:$true] %s194_s6 }
  0x48   : > { %s1159_s8 = scalar_lea.hbm %s1425_s30, 1024  ;;  %p1161_p0 = pneg %p1429_p10 }
  0x49   : > { %p1160_p13 = scmp.ne.s32.totalorder %s1425_s30, %s1159_s8  ;;  %s1164_s24 = scalar_lea.hbm %s1600_s0, 8192 }
  0x4a   : > { %p1165_p7 = scmp.lt.u32.totalorder %s1425_s30, %s1600_s0  ;;  %p1166_p9 = scmp.lt.u32.totalorder %s1164_s24, %s1159_s8 }
  0x4b   : > { %p1162_p3 = pnand %p1161_p0, %p1160_p13  ;;  %p1168_p1 = scmp.lt.u32.totalorder %s1159_s8, %s1425_s30 }
  0x4c   : > { %p1167_p12 = por %p1166_p9, %p1165_p7 }
  0x4d   : > { %p1163_p5 = pneg %p1162_p3 }
  0x4e   : > { %p1169_p2 = por %p1168_p1, %p1167_p12 }
  0x50   : > { %p1170_p4 = pnand %p1169_p2, %p1163_p5 }
  0x52   : > { %1173 = shalt.err (!%p1170_p4)
}
  0x53   : > { %s1174_s20 = scalar_lea.vmem %s1427_s6, 1024  ;;  %s1265_s29 = smov [#allocation2]  }
  0x54   : > { %p1175_p8 = scmp.ne.s32.totalorder %s1427_s6, %s1174_s20  ;;  %s1179_s5 = sshll.u32 %s1265_s29, 4  ;;  %s1180_s5 = int_to_ptr.vmem [resolvable:$false] %s1179_s5 }
  0x55   : > { %s1181_s9 = scalar_lea.vmem %s1180_s5, 2048  ;;  %p1182_p3 = scmp.lt.s32.totalorder %s1427_s6, %s1180_s5 }
  0x56   : > { %p1177_p11 = pnand %p1175_p8, %p1161_p0  ;;  %p1183_p7 = scmp.lt.s32.totalorder %s1181_s9, %s1174_s20 }
  0x58   : > { %p1178_p13 = pneg %p1177_p11  ;;  %p1184_p9 = por %p1183_p7, %p1182_p3 }
  0x5a   : > { %p1185_p12 = pnand %p1184_p9, %p1178_p13 }
  0x5c   : > { %1188 = shalt.err (!%p1185_p12)
}
  0x5d   : > { %1022 = dma.hbm_to_vmem [thread:$0]  (!%p1429_p10), %s1425_s30, 1024, %s1427_s6, %s1433_s7, %s1263_s11, %s1263_s11, %s1264_s12  }
  0x5e   : > { %p1615_p0 = scmp.ne.s32.totalorder %s1610_s23, 0 }
  0x5f   : > { %s1467_s8 = sand.u32 (!%p1615_p0), 1, %s1251_s16   ;;  %p1616_p5 = scmp.ne.s32.totalorder (!%p1615_p0), %s1608_s21, 0 }
  0x60   : > { %206 = sbr.rel (%p1615_p0) target bundleno = 932 (0x3a4), region = 36  ;;  %s785_s10 = sshll.u32 (!%p1615_p0), %s1467_s8, 6 }
  0x61   : > { %s209_s24 = scalar_lea.sflag (!%p1615_p0), [#allocation3], %s1467_s8  ;;  %s1473_s25 = scalar_lea.vmem (!%p1615_p0), [#allocation2], %s785_s10 }
  0x67   : > { %1234 = dma.done.wait (%p1616_p5), %s209_s24, 1024  }
  0x68   : > { %1236 = vsyncadd (%p1616_p5), %s209_s24, 4294966272  ;;  %p1617_p10 = scmp.eq.s32.totalorder %s1315_s19, 0 }
  0x6a   : > { %1238 = dma.done.wait (%p1617_p10), [#allocation6], 4096   ;;  %p1618_p1 = pmov %p1617_p10 }
  0x6b   : > { %v259_v0 = vld [vmem:[#allocation5] sm:$0xff]  ;;  %v260_v1 = vld [vmem:[#allocation5 + $0x8] sm:$0xff]  ;;  %v261_v2 = vld [vmem:[#allocation5 + $0x10] sm:$0xff]  ;;  %s1535_s27 = scalar_lea.vmem [#allocation8], %s785_s10  ;;  %s799_s20 = sshll.u32 %s1315_s19, 10 }
  0x6c   : > { %1240 = vsyncadd (%p1618_p1), [#allocation6], 4294963200  ;;  %v936_v3 = vpack.c.bf16 %v260_v1, %v259_v0  ;;  %v262_v4 = vld [vmem:[#allocation5 + $0x18] sm:$0xff]  ;;  %v263_v6 = vld [vmem:[#allocation5 + $0x20] sm:$0xff]  ;;  %s684_s29 = sshll.u32 %s1535_s27, 4  ;;  %s1553_s10 = scalar_lea.hbm %s1604_s4, %s799_s20  ;;  %s1555_s29 = int_to_ptr.vmem [resolvable:$true] %s684_s29 }
  0x6d   : > { %v940_v5 = vpack.c.bf16 %v262_v4, %v261_v2  ;;  %v264_v7 = vld [vmem:[#allocation5 + $0x28] sm:$0xff]  ;;  %v251_v9 = vld [vmem:[%s1473_s25] sm:$0xff]  ;;  %v265_v10 = vld [vmem:[#allocation5 + $0x30] sm:$0xff]  ;;  %s671_s19 = scalar_lea.sflag [#allocation4], %s1467_s8  ;;  %s1189_s24 = scalar_lea.vmem %s1555_s29, 1024 }
  0x6e   : > { %937 = vmatprep.subr.bf16.mxu0 %v936_v3  ;;  %v944_v8 = vpack.c.bf16 %v264_v7, %v263_v6  ;;  %v266_v11 = vld [vmem:[#allocation5 + $0x38] sm:$0xff]  ;;  %880 = vmatprep.mubr.f32.mxu0 %v251_v9  ;;  %v424_v12 = vld [vmem:[#allocation7] sm:$0xff]  ;;  %v425_v13 = vld [vmem:[#allocation7 + $0x8] sm:$0xff]  ;;  %p1190_p2 = scmp.ne.s32.totalorder %s1555_s29, %s1189_s24 }
  0x6f   : > { %939 = vmatpush3.bf16.msra.mxu0 %v936_v3  ;;  %v426_v14 = vld [vmem:[#allocation7 + $0x10] sm:$0xff]  ;;  %v948_v15 = vpack.c.bf16 %v266_v11, %v265_v10  ;;  %v267_v16 = vld [vmem:[#allocation5 + $0x40] sm:$0xff]  ;;  %v968_v17 = vpack.c.bf16 %v425_v13, %v424_v12  ;;  %v427_v18 = vld [vmem:[#allocation7 + $0x18] sm:$0xff] }
  0x70   : > { %941 = vmatprep.subr.bf16.mxu0 %v940_v5  ;;  %v268_v19 = vld [vmem:[#allocation5 + $0x48] sm:$0xff]  ;;  %v972_v20 = vpack.c.bf16 %v427_v18, %v426_v14  ;;  %v428_v21 = vld [vmem:[#allocation7 + $0x20] sm:$0xff]  ;;  %v269_v25 = vld [vmem:[#allocation5 + $0x50] sm:$0xff]  ;;  %p1191_p4 = pnand %p1190_p2, %p1412_p6 }
  0x71   : > { %v429_v22 = vld [vmem:[#allocation7 + $0x28] sm:$0xff]  ;;  %969 = vmatprep.subr.bf16.mxu1 %v968_v17  ;;  %v952_v23 = vpack.c.bf16 %v268_v19, %v267_v16  ;;  %v270_v26 = vld [vmem:[#allocation5 + $0x58] sm:$0xff]  ;;  %v271_v28 = vld [vmem:[#allocation5 + $0x60] sm:$0xff] }
  0x72   : > { %971 = vmatpush3.bf16.msra.mxu1 %v968_v17  ;;  %v976_v24 = vpack.c.bf16 %v429_v22, %v428_v21  ;;  %v956_v27 = vpack.c.bf16 %v270_v26, %v269_v25  ;;  %v272_v29 = vld [vmem:[#allocation5 + $0x68] sm:$0xff]  ;;  %v273_v31 = vld [vmem:[#allocation5 + $0x70] sm:$0xff]  ;;  %v274_v32 = vld [vmem:[#allocation5 + $0x78] sm:$0xff]  ;;  %p1192_p8 = pneg %p1191_p4 }
  0x73   : > { %943 = vmatpush3.bf16.msra.mxu0 %v940_v5  ;;  %973 = vmatprep.subr.bf16.mxu1 %v972_v20  ;;  %v960_v30 = vpack.c.bf16 %v272_v29, %v271_v28  ;;  %v964_v33 = vpack.c.bf16 %v274_v32, %v273_v31  ;;  %v252_v34 = vld [vmem:[%s1473_s25 + $0x8] sm:$0xff]  ;;  %v253_v35 = vld [vmem:[%s1473_s25 + $0x10] sm:$0xff]  ;;  %v254_v36 = vld [vmem:[%s1473_s25 + $0x18] sm:$0xff] }
  0x74   : > { %945 = vmatprep.subr.bf16.mxu0 %v944_v8  ;;  %v255_v37 = vld [vmem:[%s1473_s25 + $0x20] sm:$0xff]  ;;  %v256_v38 = vld [vmem:[%s1473_s25 + $0x28] sm:$0xff]  ;;  %v257_v39 = vld [vmem:[%s1473_s25 + $0x30] sm:$0xff] }
  0x75   : > { %v258_v40 = vld [vmem:[%s1473_s25 + $0x38] sm:$0xff]  ;;  %v430_v41 = vld [vmem:[#allocation7 + $0x30] sm:$0xff]  ;;  %v432_v44 = vld [vmem:[#allocation7 + $0x40] sm:$0xff]  ;;  %s1266_s25 = smov [#allocation8]  }
  0x76   : > { %975 = vmatpush3.bf16.msra.mxu1 %v972_v20  ;;  %v431_v42 = vld [vmem:[#allocation7 + $0x38] sm:$0xff]  ;;  %v433_v45 = vld [vmem:[#allocation7 + $0x48] sm:$0xff]  ;;  %v434_v47 = vld [vmem:[#allocation7 + $0x50] sm:$0xff]  ;;  %s1193_s21 = sshll.u32 %s1266_s25, 4  ;;  %s1194_s21 = int_to_ptr.vmem [resolvable:$false] %s1193_s21 }
  0x77   : > { %947 = vmatpush3.bf16.msra.mxu0 %v944_v8  ;;  %977 = vmatprep.subr.bf16.mxu1 %v976_v24  ;;  %v980_v43 = vpack.c.bf16 %v431_v42, %v430_v41  ;;  %v984_v46 = vpack.c.bf16 %v433_v45, %v432_v44  ;;  %v435_v48 = vld [vmem:[#allocation7 + $0x58] sm:$0xff]  ;;  %v436_v50 = vld [vmem:[#allocation7 + $0x60] sm:$0xff]  ;;  %v437_v51 = vld [vmem:[#allocation7 + $0x68] sm:$0xff]  ;;  %s1195_s23 = scalar_lea.vmem %s1194_s21, 2048  ;;  %p1196_p11 = scmp.lt.s32.totalorder %s1555_s29, %s1194_s21 }
  0x78   : > { %949 = vmatprep.subr.bf16.mxu0 %v948_v15  ;;  %v988_v49 = vpack.c.bf16 %v435_v48, %v434_v47  ;;  %v992_v52 = vpack.c.bf16 %v437_v51, %v436_v50  ;;  %v438_v53 = vld [vmem:[#allocation7 + $0x70] sm:$0xff]  ;;  %v439_v54 = vld [vmem:[#allocation7 + $0x78] sm:$0xff]  ;;  %v789_v56 = vld [vmem:[%s1603_s3] ss:$0 sm:$0xff]  ;;  %p1197_p13 = scmp.lt.s32.totalorder %s1195_s23, %s1189_s24 }
  0x79   : > { %v996_v55 = vpack.c.bf16 %v439_v54, %v438_v53 }
  0x7a   : > { %979 = vmatpush3.bf16.msra.mxu1 %v976_v24  ;;  %p1198_p3 = por %p1197_p13, %p1196_p11 }
  0x7b   : > { %951 = vmatpush3.bf16.msra.mxu0 %v948_v15  ;;  %981 = vmatprep.subr.bf16.mxu1 %v980_v43 }
  0x7c   : > { %953 = vmatprep.subr.bf16.mxu0 %v952_v23  ;;  %p1199_p7 = pnand %p1198_p3, %p1192_p8 }
  0x7e   : > { %983 = vmatpush3.bf16.msra.mxu1 %v980_v43 }
  0x7f   : > { %955 = vmatpush3.bf16.msra.mxu0 %v952_v23  ;;  %985 = vmatprep.subr.bf16.mxu1 %v984_v46 }
  0x80   : > { %957 = vmatprep.subr.bf16.mxu0 %v956_v27 }
  0x82   : > { %987 = vmatpush3.bf16.msra.mxu1 %v984_v46 }
  0x83   : > { %959 = vmatpush3.bf16.msra.mxu0 %v956_v27  ;;  %989 = vmatprep.subr.bf16.mxu1 %v988_v49 }
  0x84   : > { %961 = vmatprep.subr.bf16.mxu0 %v960_v30 }
  0x86   : > { %991 = vmatpush3.bf16.msra.mxu1 %v988_v49  ;;  %v790_v49 = vld [vmem:[%s1603_s3 + $0x1] ss:$0 sm:$0xff] }
  0x87   : > { %963 = vmatpush3.bf16.msra.mxu0 %v960_v30  ;;  %993 = vmatprep.subr.bf16.mxu1 %v992_v52 }
  0x88   : > { %965 = vmatprep.subr.bf16.mxu0 %v964_v33 }
  0x8a   : > { %995 = vmatpush3.bf16.msra.mxu1 %v992_v52 }
  0x8b   : > { %967 = vmatpush3.bf16.msra.mxu0 %v964_v33  ;;  %997 = vmatprep.subr.bf16.mxu1 %v996_v55 }
  0x8e   : > { %881 = vmatmul.mubr.f32.vlgmr.msra.gmra.mrb[0].mxu0 %v252_v34  ;;  %999 = vmatpush3.bf16.msra.mxu1 %v996_v55 }
  0x8f   : > { %883 = vmatprep.mubr.f32.mxu0 %v253_v35 }
  0x92   : > { %884 = vmatmul.mubr.f32.gmra.mrb[2].mxu0 %v254_v36 }
  0x93   : > { %886 = vmatprep.mubr.f32.mxu0 %v255_v37 }
  0x96   : > { %887 = vmatmul.mubr.f32.gmra.mrb[4].mxu0 %v256_v38 }
  0x97   : > { %889 = vmatprep.mubr.f32.mxu0 %v257_v39 }
  0x9a   : > { %890 = vmatmul.mubr.f32.gmra.mrb[6].mxu0 %v258_v40 }
 0x161   : > { %v882_v57 = vpop.f32.mrb[0].mxu0 }
 0x162   : > { %v351_v58 = vadd.f32 %v882_v57, %v789_v56  ;;  %v345_v59 = vpop.f32.mrb[1].mxu0 }
 0x163   : > { %v346_v60 = vadd.f32 %v789_v56, %v345_v59 }
 0x164   : > { %v393_v61 = vmul.f32 0.70710677, %v351_v58  ;;  %v385_v22 = vmul.f32 0.5, %v351_v58 }
 0x165   : > { %v392_v62 = vmul.f32 0.70710677, %v346_v60  ;;  %v885_v63 = vpop.f32.mrb[2].mxu0  ;;  %v384_v20 = vmul.f32 0.5, %v346_v60 }
 0x166   : > { %1071 = verf.f32 %v393_v61  ;;  %v361_v0 = vadd.f32 %v885_v63, %v789_v56  ;;  %v355_v1 = vpop.f32.mrb[3].mxu0 }
 0x167   : > { %1073 = verf.f32 %v392_v62  ;;  %v356_v2 = vadd.f32 %v789_v56, %v355_v1 }
 0x168   : > { %v395_v3 = vmul.f32 0.70710677, %v361_v0  ;;  %v387_v30 = vmul.f32 0.5, %v361_v0 }
 0x169   : > { %v394_v4 = vmul.f32 0.70710677, %v356_v2  ;;  %v888_v5 = vpop.f32.mrb[4].mxu0  ;;  %v386_v28 = vmul.f32 0.5, %v356_v2 }
 0x16a   : > { %1075 = verf.f32 %v395_v3  ;;  %v371_v6 = vadd.f32 %v888_v5, %v789_v56  ;;  %v365_v7 = vpop.f32.mrb[5].mxu0 }
 0x16b   : > { %1077 = verf.f32 %v394_v4  ;;  %v366_v8 = vadd.f32 %v789_v56, %v365_v7 }
 0x16c   : > { %v397_v9 = vmul.f32 0.70710677, %v371_v6  ;;  %v389_v38 = vmul.f32 0.5, %v371_v6 }
 0x16d   : > { %v396_v10 = vmul.f32 0.70710677, %v366_v8  ;;  %v891_v11 = vpop.f32.mrb[6].mxu0  ;;  %v388_v36 = vmul.f32 0.5, %v366_v8 }
 0x16e   : > { %1079 = verf.f32 %v397_v9  ;;  %v381_v12 = vadd.f32 %v891_v11, %v789_v56  ;;  %v375_v13 = vpop.f32.mrb[7].mxu0 }
 0x16f   : > { %1081 = verf.f32 %v396_v10  ;;  %v376_v14 = vadd.f32 %v789_v56, %v375_v13 }
 0x170   : > { %v1072_v15 = vpop.eup %1071  ;;  %v399_v16 = vmul.f32 0.70710677, %v381_v12  ;;  %v391_v46 = vmul.f32 0.5, %v381_v12 }
 0x171   : > { %v1074_v17 = vpop.eup %1073  ;;  %v409_v18 = vadd.f32 1.0, %v1072_v15  ;;  %v398_v19 = vmul.f32 0.70710677, %v376_v14  ;;  %v390_v44 = vmul.f32 0.5, %v376_v14 }
 0x172   : > { %1083 = verf.f32 %v399_v16  ;;  %v408_v21 = vadd.f32 1.0, %v1074_v17 }
 0x173   : > { %1085 = verf.f32 %v398_v19  ;;  %v417_v27 = vmul.f32 %v409_v18, %v385_v22 }
 0x174   : > { %v1076_v23 = vpop.eup %1075  ;;  %v416_v24 = vmul.f32 %v408_v21, %v384_v20 }
 0x175   : > { %v1078_v25 = vpop.eup %1077  ;;  %v411_v26 = vadd.f32 1.0, %v1076_v23 }
 0x176   : > { %v410_v29 = vadd.f32 1.0, %v1078_v25  ;;  %924 = vmatprep.mubr.f32.mxu1 %v416_v24 }
 0x177   : > { %925 = vmatmul.mubr.f32.vlgmr.msra.gmra.mrb[0].mxu1 %v417_v27  ;;  %v419_v35 = vmul.f32 %v411_v26, %v387_v30 }
 0x178   : > { %v1080_v31 = vpop.eup %1079  ;;  %v418_v32 = vmul.f32 %v410_v29, %v386_v28 }
 0x179   : > { %v1082_v33 = vpop.eup %1081  ;;  %v413_v34 = vadd.f32 1.0, %v1080_v31 }
 0x17a   : > { %v412_v37 = vadd.f32 1.0, %v1082_v33  ;;  %927 = vmatprep.mubr.f32.mxu1 %v418_v32 }
 0x17b   : > { %928 = vmatmul.mubr.f32.gmra.mrb[2].mxu1 %v419_v35  ;;  %v421_v43 = vmul.f32 %v413_v34, %v389_v38 }
 0x17c   : > { %v1084_v39 = vpop.eup %1083  ;;  %v420_v40 = vmul.f32 %v412_v37, %v388_v36 }
 0x17d   : > { %v1086_v41 = vpop.eup %1085  ;;  %v415_v42 = vadd.f32 1.0, %v1084_v39 }
 0x17e   : > { %v414_v45 = vadd.f32 1.0, %v1086_v41  ;;  %930 = vmatprep.mubr.f32.mxu1 %v420_v40 }
 0x17f   : > { %931 = vmatmul.mubr.f32.gmra.mrb[4].mxu1 %v421_v43  ;;  %v423_v48 = vmul.f32 %v415_v42, %v391_v46 }
 0x180   : > { %v422_v47 = vmul.f32 %v414_v45, %v390_v44 }
 0x182   : > { %933 = vmatprep.mubr.f32.mxu1 %v422_v47 }
 0x183   : > { %934 = vmatmul.mubr.f32.gmra.mrb[6].mxu1 %v423_v48 }
 0x24a   : > { %v926_v50 = vpop.f32.mrb[0].mxu1 }
 0x24b   : > { %v516_v51 = vadd.f32 %v926_v50, %v790_v49  ;;  %v510_v52 = vpop.f32.mrb[1].mxu1 }
 0x24c   : > { %v511_v54 = vadd.f32 %v790_v49, %v510_v52 }
 0x24d   : > { %551 = vadd.xlane.f32.xlu0 %v516_v51 }
 0x24e   : > { %v929_v53 = vpop.f32.mrb[2].mxu1 }
 0x24f   : > { %v526_v55 = vadd.f32 %v929_v53, %v790_v49  ;;  %v520_v56 = vpop.f32.mrb[3].mxu1 }
 0x250   : > { %v521_v58 = vadd.f32 %v790_v49, %v520_v56 }
 0x251   : > { %555 = vadd.xlane.f32.xlu1 %v526_v55  ;;  %549 = vadd.xlane.f32.xlu0 %v511_v54 }
 0x252   : > { %v932_v57 = vpop.f32.mrb[4].mxu1 }
 0x253   : > { %v530_v59 = vpop.f32.mrb[5].mxu1  ;;  %v536_v62 = vadd.f32 %v932_v57, %v790_v49  ;;  %v792_v57 = vld [vmem:[%s1603_s3 + $0x3] ss:$0 sm:$0xff] }
 0x254   : > { %v531_v60 = vadd.f32 %v790_v49, %v530_v59 }
 0x255   : > { %553 = vadd.xlane.f32.xlu1 %v521_v58 }
 0x256   : > { %v935_v61 = vpop.f32.mrb[6].mxu1  ;;  %557 = vadd.xlane.f32.xlu0 %v531_v60 }
 0x257   : > { %v540_v63 = vpop.f32.mrb[7].mxu1  ;;  %v546_v1 = vadd.f32 %v935_v61, %v790_v49 }
 0x258   : > { %v541_v0 = vadd.f32 %v790_v49, %v540_v63 }
 0x259   : > { %559 = vadd.xlane.f32.xlu1 %v536_v62 }
 0x25a   : > { %561 = vadd.xlane.f32.xlu0 %v541_v0 }
 0x25d   : > { %563 = vadd.xlane.f32.xlu1 %v546_v1 }
 0x2da   : > { %v552_v2 = vpop.xlane.xlu0 %551 }
 0x2db   : > { %v567_v3 = vmul.f32 0.0078125, %v552_v2 }
 0x2dd   : > { %v575_v4 = vsub.f32 %v516_v51, %v567_v3  ;;  %v791_v51 = vld [vmem:[%s1603_s3 + $0x2] ss:$0 sm:$0xff] }
 0x2de   : > { %v556_v5 = vpop.xlane.xlu1 %555  ;;  %v550_v6 = vpop.xlane.xlu0 %549 }
 0x2df   : > { %v569_v7 = vmul.f32 0.0078125, %v556_v5  ;;  %v566_v8 = vmul.f32 0.0078125, %v550_v6  ;;  %v583_v9 = vmul.f32 %v575_v4, %v575_v4 }
 0x2e1   : > { %v1497_v10 = vsub.f32 %v526_v55, %v569_v7  ;;  %v1499_v11 = vsub.f32 %v511_v54, %v566_v8  ;;  %592 = vadd.xlane.f32.xlu1 %v583_v9 }
 0x2e2   : > { %v554_v12 = vpop.xlane.xlu1 %553 }
 0x2e3   : > { %v568_v13 = vmul.f32 0.0078125, %v554_v12  ;;  %v558_v14 = vpop.xlane.xlu0 %557  ;;  %v585_v15 = vmul.f32 %v1497_v10, %v1497_v10  ;;  %v582_v16 = vmul.f32 %v1499_v11, %v1499_v11 }
 0x2e4   : > { %v570_v17 = vmul.f32 0.0078125, %v558_v14 }
 0x2e5   : > { %v1505_v18 = vsub.f32 %v521_v58, %v568_v13  ;;  %596 = vadd.xlane.f32.xlu1 %v585_v15  ;;  %590 = vadd.xlane.f32.xlu0 %v582_v16 }
 0x2e6   : > { %v560_v19 = vpop.xlane.xlu1 %559  ;;  %v1507_v20 = vsub.f32 %v531_v60, %v570_v17 }
 0x2e7   : > { %v571_v21 = vmul.f32 0.0078125, %v560_v19  ;;  %v562_v22 = vpop.xlane.xlu0 %561  ;;  %v584_v23 = vmul.f32 %v1505_v18, %v1505_v18 }
 0x2e8   : > { %v572_v24 = vmul.f32 0.0078125, %v562_v22  ;;  %v586_v30 = vmul.f32 %v1507_v20, %v1507_v20 }
 0x2e9   : > { %v1511_v25 = vsub.f32 %v536_v62, %v571_v21  ;;  %594 = vadd.xlane.f32.xlu0 %v584_v23 }
 0x2ea   : > { %v564_v26 = vpop.xlane.xlu1 %563  ;;  %v1513_v27 = vsub.f32 %v541_v0, %v572_v24 }
 0x2eb   : > { %v573_v28 = vmul.f32 0.0078125, %v564_v26  ;;  %v587_v29 = vmul.f32 %v1511_v25, %v1511_v25 }
 0x2ec   : > { %v588_v33 = vmul.f32 %v1513_v27, %v1513_v27 }
 0x2ed   : > { %v1519_v31 = vsub.f32 %v546_v1, %v573_v28  ;;  %600 = vadd.xlane.f32.xlu1 %v587_v29  ;;  %598 = vadd.xlane.f32.xlu0 %v586_v30 }
 0x2ef   : > { %v589_v32 = vmul.f32 %v1519_v31, %v1519_v31 }
 0x2f1   : > { %604 = vadd.xlane.f32.xlu1 %v589_v32  ;;  %602 = vadd.xlane.f32.xlu0 %v588_v33 }
 0x36e   : > { %v593_v34 = vpop.xlane.xlu1 %592 }
 0x36f   : > { %v607_v35 = vmul.f32 0.0078125, %v593_v34 }
 0x371   : > { %v615_v36 = vadd.f32 1e-05, %v607_v35 }
 0x372   : > { %v597_v37 = vpop.xlane.xlu1 %596  ;;  %v591_v38 = vpop.xlane.xlu0 %590 }
 0x373   : > { %1087 = vrsqrt.f32 %v615_v36  ;;  %v609_v39 = vmul.f32 0.0078125, %v597_v37  ;;  %v606_v40 = vmul.f32 0.0078125, %v591_v38 }
 0x375   : > { %v617_v41 = vadd.f32 1e-05, %v609_v39  ;;  %v614_v42 = vadd.f32 1e-05, %v606_v40 }
 0x376   : > { %v595_v43 = vpop.xlane.xlu0 %594 }
 0x377   : > { %1089 = vrsqrt.f32 %v617_v41  ;;  %v608_v44 = vmul.f32 0.0078125, %v595_v43 }
 0x378   : > { %1091 = vrsqrt.f32 %v614_v42 }
 0x379   : > { %v616_v45 = vadd.f32 1e-05, %v608_v44 }
 0x37a   : > { %v601_v46 = vpop.xlane.xlu1 %600  ;;  %v599_v47 = vpop.xlane.xlu0 %598 }
 0x37b   : > { %1093 = vrsqrt.f32 %v616_v45  ;;  %v611_v48 = vmul.f32 0.0078125, %v601_v46  ;;  %v610_v49 = vmul.f32 0.0078125, %v599_v47 }
 0x37d   : > { %v1088_v50 = vpop.eup %1087  ;;  %v619_v52 = vadd.f32 1e-05, %v611_v48  ;;  %v618_v53 = vadd.f32 1e-05, %v610_v49 }
 0x37e   : > { %v631_v54 = vmul.f32 %v1088_v50, %v575_v4  ;;  %v605_v55 = vpop.xlane.xlu1 %604  ;;  %v603_v56 = vpop.xlane.xlu0 %602 }
 0x37f   : > { %1095 = vrsqrt.f32 %v619_v52  ;;  %v613_v58 = vmul.f32 0.0078125, %v605_v55  ;;  %v612_v59 = vmul.f32 0.0078125, %v603_v56 }
 0x380   : > { %v643_v60 = vmul.f32 %v791_v51, %v631_v54  ;;  %1097 = vrsqrt.f32 %v618_v53 }
 0x381   : > { %v1090_v61 = vpop.eup %1089  ;;  %v621_v62 = vadd.f32 1e-05, %v613_v58  ;;  %v620_v63 = vadd.f32 1e-05, %v612_v59 }
 0x382   : > { %v1092_v0 = vpop.eup %1091  ;;  %v655_v1 = vadd.f32 %v792_v57, %v643_v60  ;;  %v633_v2 = vmul.f32 %v1090_v61, %v1497_v10 }
 0x383   : > { %v630_v3 = vmul.f32 %v1092_v0, %v1499_v11  ;;  %1099 = vrsqrt.f32 %v621_v62 }
 0x384   : > { %663 = vst [vmem:[%s1535_s27 + $0x8] sm:$0xff] %v655_v1  ;;  %v645_v4 = vmul.f32 %v791_v51, %v633_v2  ;;  %1101 = vrsqrt.f32 %v620_v63 }
 0x385   : > { %v1094_v5 = vpop.eup %1093  ;;  %v642_v6 = vmul.f32 %v791_v51, %v630_v3 }
 0x386   : > { %v657_v7 = vadd.f32 %v792_v57, %v645_v4  ;;  %v632_v8 = vmul.f32 %v1094_v5, %v1505_v18 }
 0x387   : > { %v654_v9 = vadd.f32 %v792_v57, %v642_v6 }
 0x388   : > { %665 = vst [vmem:[%s1535_s27 + $0x18] sm:$0xff] %v657_v7  ;;  %v644_v10 = vmul.f32 %v791_v51, %v632_v8 }
 0x389   : > { %v1096_v11 = vpop.eup %1095  ;;  %662 = vst [vmem:[%s1535_s27] sm:$0xff] %v654_v9 }
 0x38a   : > { %v1098_v12 = vpop.eup %1097  ;;  %v656_v13 = vadd.f32 %v792_v57, %v644_v10  ;;  %v635_v14 = vmul.f32 %v1096_v11, %v1511_v25 }
 0x38b   : > { %v634_v15 = vmul.f32 %v1098_v12, %v1507_v20 }
 0x38c   : > { %664 = vst [vmem:[%s1535_s27 + $0x10] sm:$0xff] %v656_v13  ;;  %v647_v16 = vmul.f32 %v791_v51, %v635_v14 }
 0x38d   : > { %v1100_v17 = vpop.eup %1099  ;;  %v646_v19 = vmul.f32 %v791_v51, %v634_v15 }
 0x38e   : > { %v1102_v18 = vpop.eup %1101  ;;  %v659_v21 = vadd.f32 %v792_v57, %v647_v16  ;;  %v637_v22 = vmul.f32 %v1100_v17, %v1519_v31 }
 0x38f   : > { %v658_v23 = vadd.f32 %v792_v57, %v646_v19  ;;  %v636_v24 = vmul.f32 %v1102_v18, %v1513_v27 }
 0x390   : > { %667 = vst [vmem:[%s1535_s27 + $0x28] sm:$0xff] %v659_v21  ;;  %v649_v25 = vmul.f32 %v791_v51, %v637_v22 }
 0x391   : > { %666 = vst [vmem:[%s1535_s27 + $0x20] sm:$0xff] %v658_v23  ;;  %v648_v20 = vmul.f32 %v791_v51, %v636_v24 }
 0x392   : > { %v661_v26 = vadd.f32 %v792_v57, %v649_v25 }
 0x393   : > { %v660_v28 = vadd.f32 %v792_v57, %v648_v20 }
 0x394   : > { %669 = vst [vmem:[%s1535_s27 + $0x38] sm:$0xff] %v661_v26 }
 0x395   : > { %668 = vst [vmem:[%s1535_s27 + $0x30] sm:$0xff] %v660_v28 }
 0x396   : > { %1202 = shalt.err (!%p1199_p7)
}
 0x397   : > { %s1203_s11 = scalar_lea.hbm %s1553_s10, 1024  ;;  %s1207_s6 = scalar_lea.hbm %s1604_s4, 8192 }
 0x398   : > { %p1204_p9 = scmp.ne.s32.totalorder %s1553_s10, %s1203_s11  ;;  %p1208_p5 = scmp.lt.u32.totalorder %s1553_s10, %s1604_s4 }
 0x399   : > { %p1209_p10 = scmp.lt.u32.totalorder %s1207_s6, %s1203_s11  ;;  %p1211_p2 = scmp.lt.u32.totalorder %s1203_s11, %s1553_s10 }
 0x39a   : > { %p1205_p12 = pnand %p1204_p9, %p1412_p6 }
 0x39b   : > { %p1210_p1 = por %p1209_p10, %p1208_p5 }
 0x39c   : > { %p1206_p0 = pneg %p1205_p12 }
 0x39d   : > { %p1212_p4 = por %p1211_p2, %p1210_p1 }
 0x39f   : > { %p1213_p8 = pnand %p1212_p4, %p1206_p0 }
 0x3a1   : > { %1216 = shalt.err (!%p1213_p8)
}
 0x3a2   : > { %s1267_s27 = smov 128   ;;  %s1268_s20 = smov 8  }
 0x3a3   : > { %1010 = dma.vmem_to_hbm [thread:$0]  (%p1412_p6), %s1555_s29, 1024, %s1553_s10, %s671_s19, %s1267_s27, %s1267_s27, %s1268_s20  }
 0x3a4 PF: > { %p1032_p11 = scmp.ge.s32.totalorder %s1259_s18, 2  ;;  %s699_s5 = sand.u32 1, %s1247_s15  }
 0x3a5   : > { %p1619_p13 = scmp.ne.s32.totalorder %s1609_s22, 0  ;;  %s700_s9 = scalar_lea.sflag [#allocation4], %s699_s5 }
 0x3a7   : > { %p1024_p3 = pnand %p1032_p11, %p1619_p13 }
 0x3a9   : > { %1242 = dma.done.wait (!%p1024_p3), %s700_s9, 1024  }
 0x3aa   : > { %1244 = vsyncadd (!%p1024_p3), %s700_s9, 4294966272  ;;  %p18_p7 = scmp.ge.s32.totalorder %s1402_s26, 10   ;;  %s1620_s15 = smov %s1251_s16 }
 0x3ab   : > { %s1621_s16 = smov %s1255_s17  ;;  %s1622_s17 = smov %s1418_s14 }
 0x3ac   : > { %s1623_s18 = smov %s1402_s26  ;;  %20 = sbr.rel (!%p18_p7) target bundleno = 6 (0x6), region = 89 }
 0x3b3   :  { %705 = vsyncpa [#allocation3], 1 }
 0x3b4   :  { %707 = vsyncpa [#allocation3 + $0x1], 1 }
 0x3b5   :  { %708 = vsyncpa [#allocation6], 1 }
 0x3b6   :  { %709 = vsyncpa [#allocation4], 1 }
 0x3b7   :  { %711 = vsyncpa [#allocation4 + $0x1], 1 }

</bundles_post_ra>
